<compile_context>
chip_gen: v7x
topology: tpu7x:2x2x1
jax: 0.10.0
libtpu: 0.0.40
codegen_flags: <defaults>
</compile_context>

<pallas_src>
import jax
import jax.numpy as jnp
from jax.experimental import pallas as pl
from jax.experimental.pallas import tpu as pltpu

# ---- model hyper-parameters (consistent with mTANCNN.__init__) ----
BATCH      = 2
N_FEATURES = 4              # n_features (Conv1d in_channels)
N_CLASSES  = 3
SEQ_LEN    = 64             # seq_length
CONV_L1    = 8              # conv_l1
CONV_L2    = 2 * CONV_L1    # conv_l2 = 16
KERNEL     = 3              # kernel_size
POOL       = 2              # pool_size

# derived dims (mirrors mTANCNN.__init__ / forward)
L_CONV1 = SEQ_LEN - (KERNEL - 1)   # 62  after conv_1 (valid)
L_POOL1 = L_CONV1 // POOL          # 31  after relu+maxpool
L_AVG   = L_POOL1 // POOL          # 15  after avgpool
L_CONV2 = L_AVG - (KERNEL - 1)     # 13  after conv_2 (valid)
L_POOL2 = L_CONV2 // POOL          # 6   after relu+maxpool
FLAT    = CONV_L2 * L_POOL2        # 96  flatten size

FC1, FC2 = 128, 64
LEAKY_SLOPE = 0.01                 # nn.LeakyReLU default (ResBlocks only)
BN_EPS = 1e-5

# ---- packed conv-weight array row layout (convw: (144, 16) float32) ----
C1_ROW = 0                                   # conv_1: 3 taps x (4 x 8)
RB_ROW = C1_ROW + KERNEL * N_FEATURES        # 12: 4 ResBlock convs x 3 taps x (8 x 8)
C2_ROW = RB_ROW + 4 * KERNEL * CONV_L1       # 108: conv_2: 3 taps x (8 x 16)
BN_ROW = C2_ROW + KERNEL * CONV_L1           # 132: 12 BN scale/shift rows
CONVW_ROWS = BN_ROW + 12                     # 144

# ---- packed fc weights (fcw: (224, 128) bf16): rows 0..95 fc_1 (l-major), 96.. fc_2
FW2_ROW = FLAT                               # 96

# ---- small f32 fc array (fcs: (67, 128)): rows 0..63 fc_3^T, then fb1/fb2/fb3 rows
FB1_ROW, FB2_ROW, FB3_ROW = FC2, FC2 + 1, FC2 + 2


def _leaky_relu(x):
    return jnp.where(x > 0, x, LEAKY_SLOPE * x)


# ------------------------------ fused kernel --------------------------------
def fused_kernel(x_ref, convw_ref, fcw_ref, fcs_ref, o_ref, pad_ref):
    # one grid step == one batch element; all activations are 2-D (L, C) vreg values
    f32 = jnp.float32

    # per-channel BN scale/shift rows (conv bias + eval-mode BN folded at setup)
    s1 = convw_ref[BN_ROW + 0:BN_ROW + 1, 0:CONV_L1]
    t1 = convw_ref[BN_ROW + 1:BN_ROW + 2, 0:CONV_L1]
    s2 = convw_ref[BN_ROW + 10:BN_ROW + 11, 0:CONV_L2]
    t2 = convw_ref[BN_ROW + 11:BN_ROW + 12, 0:CONV_L2]

    # ---- conv_1 -> BN -> ReLU -> MaxPool(2), fully fused ------------------
    # Each pooling phase p reads the input with stride-2 taps straight from
    # x_ref; BN affine is applied per phase BEFORE the max (scale may be <0),
    # ReLU commutes with max so it is applied once after.
    def conv1_phase(p):
        acc = None
        for k in range(KERNEL):
            xk = x_ref[pl.ds(p + k, L_POOL1, stride=POOL), :]                # (31, 4)
            wk = convw_ref[C1_ROW + k * N_FEATURES:
                           C1_ROW + (k + 1) * N_FEATURES, 0:CONV_L1]         # (4, 8)
            term = jnp.dot(xk, wk, preferred_element_type=f32)
            acc = term if acc is None else acc + term
        return acc * s1 + t1

    h = jnp.maximum(jnp.maximum(conv1_phase(0), conv1_phase(1)), 0.0)        # (31, 8)

    # ---- two ResBlocks: padding=1 convs via a 33-row zero-bordered scratch -
    pad_ref[0:1, :] = jnp.zeros((1, CONV_L1), f32)
    pad_ref[L_POOL1 + 1:L_POOL1 + 2, :] = jnp.zeros((1, CONV_L1), f32)

    def rb_conv_bn(hin, j):
        # out[l] = w0.x[l-1] + w1.x[l] + w2.x[l+1]  (x[-1] = x[L] = 0)
        pad_ref[1:L_POOL1 + 1, :] = hin
        base = RB_ROW + j * KERNEL * CONV_L1
        w0 = convw_ref[base:base + CONV_L1, 0:CONV_L1]
        w1 = convw_ref[base + CONV_L1:base + 2 * CONV_L1, 0:CONV_L1]
        w2 = convw_ref[base + 2 * CONV_L1:base + 3 * CONV_L1, 0:CONV_L1]
        z = (jnp.dot(pad_ref[0:L_POOL1, :], w0, preferred_element_type=f32)
             + jnp.dot(hin, w1, preferred_element_type=f32)
             + jnp.dot(pad_ref[2:L_POOL1 + 2, :], w2, preferred_element_type=f32))
        s = convw_ref[BN_ROW + 2 + 2 * j:BN_ROW + 3 + 2 * j, 0:CONV_L1]
        t = convw_ref[BN_ROW + 3 + 2 * j:BN_ROW + 4 + 2 * j, 0:CONV_L1]
        return z * s + t

    for blk in range(2):
        r = h
        h = _leaky_relu(rb_conv_bn(h, 2 * blk))
        h = _leaky_relu(rb_conv_bn(h, 2 * blk + 1))
        h = _leaky_relu(h + r)

    # ---- AvgPool(2) -> conv_2 -> BN -> ReLU -> MaxPool(2), fully fused -----
    # Each (pool phase p, tap k) reads the two avg-pool inputs as stride-4
    # slices of h (parked once in the padded scratch); the avg-pool 1/2 is
    # folded into the BN scale.
    pad_ref[1:L_POOL1 + 1, :] = h            # h[i] lives at pad_ref[i + 1]
    s2h = s2 * 0.5

    def conv2_phase(p):
        acc = None
        for k in range(KERNEL):
            a = pad_ref[pl.ds(2 * (p + k) + 1, L_POOL2, stride=2 * POOL), :]  # (6, 8)
            b = pad_ref[pl.ds(2 * (p + k) + 2, L_POOL2, stride=2 * POOL), :]  # (6, 8)
            wk = convw_ref[C2_ROW + k * CONV_L1:
                           C2_ROW + (k + 1) * CONV_L1, 0:CONV_L2]             # (8, 16)
            term = jnp.dot(a + b, wk, preferred_element_type=f32)
            acc = term if acc is None else acc + term
        return acc * s2h + t2

    h2 = jnp.maximum(jnp.maximum(conv2_phase(0), conv2_phase(1)), 0.0)        # (6, 16)

    # ---- MLP head: PyTorch channel-major flatten folded into fc_1's packed
    #      per-position weight blocks -> accumulate over positions (no flatten
    #      buffer, everything stays in vregs).  F.relu on all three layers
    #      (matches the reference forward, including the last one).
    z = fcs_ref[FB1_ROW:FB1_ROW + 1, :]                                       # (1, 128)
    for l in range(L_POOL2):
        wl = fcw_ref[l * CONV_L2:(l + 1) * CONV_L2, :].astype(f32)            # (16, 128)
        z = z + jnp.dot(h2[l:l + 1, :], wl, preferred_element_type=f32)
    z = jnp.maximum(z, 0.0)

    w2f = fcw_ref[FW2_ROW:FW2_ROW + FC1, 0:FC2].astype(f32)                   # (128, 64)
    z = jnp.maximum(jnp.dot(z, w2f, preferred_element_type=f32)
                    + fcs_ref[FB2_ROW:FB2_ROW + 1, 0:FC2], 0.0)               # (1, 64)

    w3f = fcs_ref[0:FC2, :]                                                   # (64, 128)
    z = jnp.maximum(jnp.dot(z, w3f, preferred_element_type=f32)
                    + fcs_ref[FB3_ROW:FB3_ROW + 1, :], 0.0)                   # (1, 128)

    o_ref[0] = z      # lanes >= N_CLASSES are zero (padded fc_3 weight/bias)


# ------------------------------ wrapper --------------------------------------
def mtan_cnn_forward(x_ncl, convw, fcw, fcs):
    """x_ncl: (N, n_features, seq_length) float32 — PyTorch Conv1d layout."""
    n = x_ncl.shape[0]
    # single input-boundary layout change NCL -> NLC (lanes = channels)
    x = jnp.transpose(x_ncl, (0, 2, 1)).astype(jnp.float32)

    out = pl.pallas_call(
        fused_kernel,
        out_shape=jax.ShapeDtypeStruct((n, 1, FC1), jnp.float32),
        grid=(n,),
        in_specs=[
            pl.BlockSpec((None, SEQ_LEN, N_FEATURES), lambda b: (b, 0, 0)),
            pl.BlockSpec((CONVW_ROWS, CONV_L2), lambda b: (0, 0)),
            pl.BlockSpec((FLAT + FC1, FC1), lambda b: (0, 0)),
            pl.BlockSpec((FC2 + 3, FC1), lambda b: (0, 0)),
        ],
        out_specs=pl.BlockSpec((1, 1, FC1), lambda b: (b, 0, 0)),
        scratch_shapes=[
            pltpu.VMEM((L_POOL1 + 2, CONV_L1), jnp.float32),   # zero-bordered pad buf
        ],
        compiler_params=pltpu.CompilerParams(
            dimension_semantics=("parallel",)),
    )(x, convw, fcw, fcs)
    return out[:, 0, :N_CLASSES]


# --------------------------- parameter setup --------------------------------
def _fold_bn(conv_bias, bnp):
    """Fold conv bias + eval-mode BatchNorm into per-channel scale/shift."""
    scale = bnp['gamma'] / jnp.sqrt(bnp['var'] + BN_EPS)
    shift = bnp['beta'] - bnp['mean'] * scale + conv_bias * scale
    return scale, shift


def _pack_conv(w_oik):
    """PyTorch Conv1d weight (Cout, Cin, K) -> tap-stacked (K*Cin, Cout)."""
    cout, cin, k = w_oik.shape
    return jnp.transpose(w_oik, (2, 1, 0)).reshape(k * cin, cout)


def _pad_cols(a, width):
    return jnp.pad(a, ((0, 0), (0, width - a.shape[-1])))


def pack_params(p):
    """Consolidate all weights into 3 packed arrays (3 weight DMAs + x)."""
    # --- conv weights + folded BN scale/shift rows -> (144, 16) f32 ---------
    blocks = [_pad_cols(_pack_conv(p['conv1_w']), CONV_L2)]
    for rb in p['rb']:
        blocks.append(_pad_cols(_pack_conv(rb['w']), CONV_L2))
    blocks.append(_pack_conv(p['conv2_w']))
    s1, t1 = _fold_bn(p['conv1_b'], p['bn1'])
    bn_rows = [_pad_cols(s1[None, :], CONV_L2), _pad_cols(t1[None, :], CONV_L2)]
    for rb in p['rb']:
        s, t = _fold_bn(rb['b'], rb['bn'])
        bn_rows += [_pad_cols(s[None, :], CONV_L2), _pad_cols(t[None, :], CONV_L2)]
    s2, t2 = _fold_bn(p['conv2_b'], p['bn2'])
    bn_rows += [s2[None, :], t2[None, :]]
    convw = jnp.concatenate(blocks + bn_rows, axis=0).astype(jnp.float32)
    assert convw.shape == (CONVW_ROWS, CONV_L2), convw.shape

    # --- fc_1 (channel-major flatten folded in, position-major) + fc_2 ------
    fw1_io = p['fc1_w'].T                                          # (96, 128), row = c*6+l
    fw1_lmaj = (fw1_io.reshape(CONV_L2, L_POOL2, FC1)
                .transpose(1, 0, 2).reshape(FLAT, FC1))            # row = l*16+c
    fw2_io = p['fc2_w'].T                                          # (128, 64)
    fcw = jnp.concatenate([fw1_lmaj, _pad_cols(fw2_io, FC1)],
                          axis=0).astype(jnp.bfloat16)             # (224, 128) bf16

    # --- fc_3 + all fc biases (lane-padded to 128) -> (67, 128) f32 ---------
    fcs = jnp.concatenate([
        _pad_cols(p['fc3_w'].T, FC1),                              # rows 0..63
        p['fc1_b'][None, :],                                       # row 64
        _pad_cols(p['fc2_b'][None, :], FC1),                       # row 65
        _pad_cols(p['fc3_b'][None, :], FC1),                       # row 66
    ], axis=0).astype(jnp.float32)
    return convw, fcw, fcs


def init_params(key):
    keys = iter(jax.random.split(key, 64))

    def nrm(shape, s=0.1):
        return jax.random.normal(next(keys), shape, jnp.float32) * s

    def bn(c):
        return dict(gamma=1.0 + nrm((c,), 0.05), beta=nrm((c,), 0.05),
                    mean=nrm((c,), 0.05), var=1.0 + jnp.abs(nrm((c,), 0.05)))

    return dict(
        conv1_w=nrm((CONV_L1, N_FEATURES, KERNEL)), conv1_b=nrm((CONV_L1,), 0.05),
        bn1=bn(CONV_L1),
        rb=[dict(w=nrm((CONV_L1, CONV_L1, KERNEL)), b=nrm((CONV_L1,), 0.05),
                 bn=bn(CONV_L1)) for _ in range(4)],      # rb1.conv1, rb1.conv2, rb2.conv1, rb2.conv2
        conv2_w=nrm((CONV_L2, CONV_L1, KERNEL)), conv2_b=nrm((CONV_L2,), 0.05),
        bn2=bn(CONV_L2),
        fc1_w=nrm((FC1, FLAT)), fc1_b=nrm((FC1,), 0.05),
        fc2_w=nrm((FC2, FC1)), fc2_b=nrm((FC2,), 0.05),
        fc3_w=nrm((N_CLASSES, FC2)), fc3_b=nrm((N_CLASSES,), 0.05),
    )


# --------------------------------- main --------------------------------------
if __name__ == "__main__":
    key = jax.random.PRNGKey(0)
    k_x, k_p = jax.random.split(key)

    # PyTorch Conv1d input layout: (batch, n_features, seq_length)
    x = jax.random.normal(k_x, (BATCH, N_FEATURES, SEQ_LEN), jnp.float32)
    params = init_params(k_p)
    convw, fcw, fcs = pack_params(params)

    fwd = jax.jit(mtan_cnn_forward)
    out = fwd(x, convw, fcw, fcs)
    jax.block_until_ready(out)

    assert out.shape == (BATCH, N_CLASSES), out.shape
    assert out.dtype == jnp.float32
    assert bool(jnp.all(jnp.isfinite(out)))
    print("KERNEL_OK")
</pallas_src>

<mosaic_0001>
module attributes {stable_mosaic.version = 11 : i64} {
  func.func @fused_kernel(%arg0: i32, %arg1: memref<1x64x4xf32, #tpu.memory_space<vmem>>, %arg2: memref<144x16xf32, #tpu.memory_space<vmem>>, %arg3: memref<224x128xbf16, #tpu.memory_space<vmem>>, %arg4: memref<67x128xf32, #tpu.memory_space<vmem>>, %arg5: memref<1x1x128xf32, #tpu.memory_space<vmem>>, %arg6: memref<33x8xf32, #tpu.memory_space<vmem>>) attributes {dimension_semantics = [#tpu.dimension_semantics<parallel>], iteration_bounds = array<i64: 2>, scalar_prefetch = 0 : i64, scratch_operands = 1 : i64, tpu.core_type = #tpu.core_type<tc>, window_params = [{transform_indices = @transform_0, window_bounds = array<i64: 1, 64, 4>}, {pipeline_mode = #tpu.pipeline_mode<synchronous>, transform_indices = @transform_1, window_bounds = array<i64: 144, 16>}, {pipeline_mode = #tpu.pipeline_mode<synchronous>, transform_indices = @transform_2, window_bounds = array<i64: 224, 128>}, {pipeline_mode = #tpu.pipeline_mode<synchronous>, transform_indices = @transform_3, window_bounds = array<i64: 67, 128>}, {transform_indices = @transform_4, window_bounds = array<i64: 1, 1, 128>}]} {
    %c132 = arith.constant 132 : index
    %c0 = arith.constant 0 : index
    %0 = vector.load %arg2[%c132, %c0] : memref<144x16xf32, #tpu.memory_space<vmem>>, vector<1x8xf32>
    %c133 = arith.constant 133 : index
    %c0_0 = arith.constant 0 : index
    %1 = vector.load %arg2[%c133, %c0_0] : memref<144x16xf32, #tpu.memory_space<vmem>>, vector<1x8xf32>
    %c142 = arith.constant 142 : index
    %c0_1 = arith.constant 0 : index
    %2 = vector.load %arg2[%c142, %c0_1] : memref<144x16xf32, #tpu.memory_space<vmem>>, vector<1x16xf32>
    %c143 = arith.constant 143 : index
    %c0_2 = arith.constant 0 : index
    %3 = vector.load %arg2[%c143, %c0_2] : memref<144x16xf32, #tpu.memory_space<vmem>>, vector<1x16xf32>
    %c0_3 = arith.constant 0 : index
    %c0_4 = arith.constant 0 : index
    %c0_5 = arith.constant 0 : index
    %4 = tpu.strided_load %arg1[%c0_3, %c0_4, %c0_5] {strides = array<i32: 1, 2, 1>} : memref<1x64x4xf32, #tpu.memory_space<vmem>>, vector<1x31x4xf32>
    %5 = vector.shape_cast %4 : vector<1x31x4xf32> to vector<31x4xf32>
    %c0_6 = arith.constant 0 : index
    %c0_7 = arith.constant 0 : index
    %6 = vector.load %arg2[%c0_6, %c0_7] : memref<144x16xf32, #tpu.memory_space<vmem>>, vector<4x8xf32>
    %cst = arith.constant dense<0.000000e+00> : vector<31x8xf32>
    %7 = tpu.matmul %5, %6, %cst {dimension_numbers = #tpu.dot_dimension_numbers<[1], [0], [0], [1], [0, 0, 1, 1], [], []>} : vector<31x4xf32>, vector<4x8xf32>, vector<31x8xf32> -> vector<31x8xf32>
    %c0_8 = arith.constant 0 : index
    %c1 = arith.constant 1 : index
    %c0_9 = arith.constant 0 : index
    %8 = tpu.strided_load %arg1[%c0_8, %c1, %c0_9] {strides = array<i32: 1, 2, 1>} : memref<1x64x4xf32, #tpu.memory_space<vmem>>, vector<1x31x4xf32>
    %9 = vector.shape_cast %8 : vector<1x31x4xf32> to vector<31x4xf32>
    %c4 = arith.constant 4 : index
    %c0_10 = arith.constant 0 : index
    %10 = vector.load %arg2[%c4, %c0_10] : memref<144x16xf32, #tpu.memory_space<vmem>>, vector<4x8xf32>
    %cst_11 = arith.constant dense<0.000000e+00> : vector<31x8xf32>
    %11 = tpu.matmul %9, %10, %cst_11 {dimension_numbers = #tpu.dot_dimension_numbers<[1], [0], [0], [1], [0, 0, 1, 1], [], []>} : vector<31x4xf32>, vector<4x8xf32>, vector<31x8xf32> -> vector<31x8xf32>
    %12 = arith.addf %7, %11 : vector<31x8xf32>
    %c0_12 = arith.constant 0 : index
    %c2 = arith.constant 2 : index
    %c0_13 = arith.constant 0 : index
    %13 = tpu.strided_load %arg1[%c0_12, %c2, %c0_13] {strides = array<i32: 1, 2, 1>} : memref<1x64x4xf32, #tpu.memory_space<vmem>>, vector<1x31x4xf32>
    %14 = vector.shape_cast %13 : vector<1x31x4xf32> to vector<31x4xf32>
    %c8 = arith.constant 8 : index
    %c0_14 = arith.constant 0 : index
    %15 = vector.load %arg2[%c8, %c0_14] : memref<144x16xf32, #tpu.memory_space<vmem>>, vector<4x8xf32>
    %cst_15 = arith.constant dense<0.000000e+00> : vector<31x8xf32>
    %16 = tpu.matmul %14, %15, %cst_15 {dimension_numbers = #tpu.dot_dimension_numbers<[1], [0], [0], [1], [0, 0, 1, 1], [], []>} : vector<31x4xf32>, vector<4x8xf32>, vector<31x8xf32> -> vector<31x8xf32>
    %17 = arith.addf %12, %16 : vector<31x8xf32>
    %18 = vector.broadcast %0 : vector<1x8xf32> to vector<31x8xf32>
    %19 = arith.mulf %17, %18 : vector<31x8xf32>
    %20 = vector.broadcast %1 : vector<1x8xf32> to vector<31x8xf32>
    %21 = arith.addf %19, %20 : vector<31x8xf32>
    %c0_16 = arith.constant 0 : index
    %c1_17 = arith.constant 1 : index
    %c0_18 = arith.constant 0 : index
    %22 = tpu.strided_load %arg1[%c0_16, %c1_17, %c0_18] {strides = array<i32: 1, 2, 1>} : memref<1x64x4xf32, #tpu.memory_space<vmem>>, vector<1x31x4xf32>
    %23 = vector.shape_cast %22 : vector<1x31x4xf32> to vector<31x4xf32>
    %c0_19 = arith.constant 0 : index
    %c0_20 = arith.constant 0 : index
    %24 = vector.load %arg2[%c0_19, %c0_20] : memref<144x16xf32, #tpu.memory_space<vmem>>, vector<4x8xf32>
    %cst_21 = arith.constant dense<0.000000e+00> : vector<31x8xf32>
    %25 = tpu.matmul %23, %24, %cst_21 {dimension_numbers = #tpu.dot_dimension_numbers<[1], [0], [0], [1], [0, 0, 1, 1], [], []>} : vector<31x4xf32>, vector<4x8xf32>, vector<31x8xf32> -> vector<31x8xf32>
    %c0_22 = arith.constant 0 : index
    %c2_23 = arith.constant 2 : index
    %c0_24 = arith.constant 0 : index
    %26 = tpu.strided_load %arg1[%c0_22, %c2_23, %c0_24] {strides = array<i32: 1, 2, 1>} : memref<1x64x4xf32, #tpu.memory_space<vmem>>, vector<1x31x4xf32>
    %27 = vector.shape_cast %26 : vector<1x31x4xf32> to vector<31x4xf32>
    %c4_25 = arith.constant 4 : index
    %c0_26 = arith.constant 0 : index
    %28 = vector.load %arg2[%c4_25, %c0_26] : memref<144x16xf32, #tpu.memory_space<vmem>>, vector<4x8xf32>
    %cst_27 = arith.constant dense<0.000000e+00> : vector<31x8xf32>
    %29 = tpu.matmul %27, %28, %cst_27 {dimension_numbers = #tpu.dot_dimension_numbers<[1], [0], [0], [1], [0, 0, 1, 1], [], []>} : vector<31x4xf32>, vector<4x8xf32>, vector<31x8xf32> -> vector<31x8xf32>
    %30 = arith.addf %25, %29 : vector<31x8xf32>
    %c0_28 = arith.constant 0 : index
    %c3 = arith.constant 3 : index
    %c0_29 = arith.constant 0 : index
    %31 = tpu.strided_load %arg1[%c0_28, %c3, %c0_29] {strides = array<i32: 1, 2, 1>} : memref<1x64x4xf32, #tpu.memory_space<vmem>>, vector<1x31x4xf32>
    %32 = vector.shape_cast %31 : vector<1x31x4xf32> to vector<31x4xf32>
    %c8_30 = arith.constant 8 : index
    %c0_31 = arith.constant 0 : index
    %33 = vector.load %arg2[%c8_30, %c0_31] : memref<144x16xf32, #tpu.memory_space<vmem>>, vector<4x8xf32>
    %cst_32 = arith.constant dense<0.000000e+00> : vector<31x8xf32>
    %34 = tpu.matmul %32, %33, %cst_32 {dimension_numbers = #tpu.dot_dimension_numbers<[1], [0], [0], [1], [0, 0, 1, 1], [], []>} : vector<31x4xf32>, vector<4x8xf32>, vector<31x8xf32> -> vector<31x8xf32>
    %35 = arith.addf %30, %34 : vector<31x8xf32>
    %36 = vector.broadcast %0 : vector<1x8xf32> to vector<31x8xf32>
    %37 = arith.mulf %35, %36 : vector<31x8xf32>
    %38 = vector.broadcast %1 : vector<1x8xf32> to vector<31x8xf32>
    %39 = arith.addf %37, %38 : vector<31x8xf32>
    %40 = arith.maximumf %21, %39 : vector<31x8xf32>
    %cst_33 = arith.constant 0.000000e+00 : f32
    %41 = vector.broadcast %cst_33 : f32 to vector<31x8xf32>
    %42 = arith.maximumf %40, %41 : vector<31x8xf32>
    %cst_34 = arith.constant 0.000000e+00 : f32
    %43 = vector.broadcast %cst_34 : f32 to vector<1x8xf32>
    %c0_35 = arith.constant 0 : index
    %c0_36 = arith.constant 0 : index
    %44 = vector.load %arg6[%c0_35, %c0_36] : memref<33x8xf32, #tpu.memory_space<vmem>>, vector<1x8xf32>
    tpu.vector_store %arg6[%c0_35, %c0_36], %43 {strides = array<i32>} : memref<33x8xf32, #tpu.memory_space<vmem>>, vector<1x8xf32>,
    %cst_37 = arith.constant 0.000000e+00 : f32
    %45 = vector.broadcast %cst_37 : f32 to vector<1x8xf32>
    %c32 = arith.constant 32 : index
    %c0_38 = arith.constant 0 : index
    %46 = vector.load %arg6[%c32, %c0_38] : memref<33x8xf32, #tpu.memory_space<vmem>>, vector<1x8xf32>
    tpu.vector_store %arg6[%c32, %c0_38], %45 {strides = array<i32>} : memref<33x8xf32, #tpu.memory_space<vmem>>, vector<1x8xf32>,
    %c1_39 = arith.constant 1 : index
    %c0_40 = arith.constant 0 : index
    %47 = vector.load %arg6[%c1_39, %c0_40] : memref<33x8xf32, #tpu.memory_space<vmem>>, vector<31x8xf32>
    tpu.vector_store %arg6[%c1_39, %c0_40], %42 {strides = array<i32>} : memref<33x8xf32, #tpu.memory_space<vmem>>, vector<31x8xf32>,
    %c12 = arith.constant 12 : index
    %c0_41 = arith.constant 0 : index
    %48 = vector.load %arg2[%c12, %c0_41] : memref<144x16xf32, #tpu.memory_space<vmem>>, vector<8x8xf32>
    %c20 = arith.constant 20 : index
    %c0_42 = arith.constant 0 : index
    %49 = vector.load %arg2[%c20, %c0_42] : memref<144x16xf32, #tpu.memory_space<vmem>>, vector<8x8xf32>
    %c28 = arith.constant 28 : index
    %c0_43 = arith.constant 0 : index
    %50 = vector.load %arg2[%c28, %c0_43] : memref<144x16xf32, #tpu.memory_space<vmem>>, vector<8x8xf32>
    %c0_44 = arith.constant 0 : index
    %c0_45 = arith.constant 0 : index
    %51 = vector.load %arg6[%c0_44, %c0_45] : memref<33x8xf32, #tpu.memory_space<vmem>>, vector<31x8xf32>
    %cst_46 = arith.constant dense<0.000000e+00> : vector<31x8xf32>
    %52 = tpu.matmul %51, %48, %cst_46 {dimension_numbers = #tpu.dot_dimension_numbers<[1], [0], [0], [1], [0, 0, 1, 1], [], []>} : vector<31x8xf32>, vector<8x8xf32>, vector<31x8xf32> -> vector<31x8xf32>
    %cst_47 = arith.constant dense<0.000000e+00> : vector<31x8xf32>
    %53 = tpu.matmul %42, %49, %cst_47 {dimension_numbers = #tpu.dot_dimension_numbers<[1], [0], [0], [1], [0, 0, 1, 1], [], []>} : vector<31x8xf32>, vector<8x8xf32>, vector<31x8xf32> -> vector<31x8xf32>
    %54 = arith.addf %52, %53 : vector<31x8xf32>
    %c2_48 = arith.constant 2 : index
    %c0_49 = arith.constant 0 : index
    %55 = vector.load %arg6[%c2_48, %c0_49] : memref<33x8xf32, #tpu.memory_space<vmem>>, vector<31x8xf32>
    %cst_50 = arith.constant dense<0.000000e+00> : vector<31x8xf32>
    %56 = tpu.matmul %55, %50, %cst_50 {dimension_numbers = #tpu.dot_dimension_numbers<[1], [0], [0], [1], [0, 0, 1, 1], [], []>} : vector<31x8xf32>, vector<8x8xf32>, vector<31x8xf32> -> vector<31x8xf32>
    %57 = arith.addf %54, %56 : vector<31x8xf32>
    %c134 = arith.constant 134 : index
    %c0_51 = arith.constant 0 : index
    %58 = vector.load %arg2[%c134, %c0_51] : memref<144x16xf32, #tpu.memory_space<vmem>>, vector<1x8xf32>
    %c135 = arith.constant 135 : index
    %c0_52 = arith.constant 0 : index
    %59 = vector.load %arg2[%c135, %c0_52] : memref<144x16xf32, #tpu.memory_space<vmem>>, vector<1x8xf32>
    %60 = vector.broadcast %58 : vector<1x8xf32> to vector<31x8xf32>
    %61 = arith.mulf %57, %60 : vector<31x8xf32>
    %62 = vector.broadcast %59 : vector<1x8xf32> to vector<31x8xf32>
    %63 = arith.addf %61, %62 : vector<31x8xf32>
    %cst_53 = arith.constant 0.000000e+00 : f32
    %64 = vector.broadcast %cst_53 : f32 to vector<31x8xf32>
    %65 = arith.cmpf ogt, %63, %64 : vector<31x8xf32>
    %cst_54 = arith.constant 0.00999999977 : f32
    %66 = vector.broadcast %cst_54 : f32 to vector<31x8xf32>
    %67 = arith.mulf %66, %63 : vector<31x8xf32>
    %68 = arith.select %65, %63, %67 : vector<31x8xi1>, vector<31x8xf32>
    %c1_55 = arith.constant 1 : index
    %c0_56 = arith.constant 0 : index
    %69 = vector.load %arg6[%c1_55, %c0_56] : memref<33x8xf32, #tpu.memory_space<vmem>>, vector<31x8xf32>
    tpu.vector_store %arg6[%c1_55, %c0_56], %68 {strides = array<i32>} : memref<33x8xf32, #tpu.memory_space<vmem>>, vector<31x8xf32>,
    %c36 = arith.constant 36 : index
    %c0_57 = arith.constant 0 : index
    %70 = vector.load %arg2[%c36, %c0_57] : memref<144x16xf32, #tpu.memory_space<vmem>>, vector<8x8xf32>
    %c44 = arith.constant 44 : index
    %c0_58 = arith.constant 0 : index
    %71 = vector.load %arg2[%c44, %c0_58] : memref<144x16xf32, #tpu.memory_space<vmem>>, vector<8x8xf32>
    %c52 = arith.constant 52 : index
    %c0_59 = arith.constant 0 : index
    %72 = vector.load %arg2[%c52, %c0_59] : memref<144x16xf32, #tpu.memory_space<vmem>>, vector<8x8xf32>
    %c0_60 = arith.constant 0 : index
    %c0_61 = arith.constant 0 : index
    %73 = vector.load %arg6[%c0_60, %c0_61] : memref<33x8xf32, #tpu.memory_space<vmem>>, vector<31x8xf32>
    %cst_62 = arith.constant dense<0.000000e+00> : vector<31x8xf32>
    %74 = tpu.matmul %73, %70, %cst_62 {dimension_numbers = #tpu.dot_dimension_numbers<[1], [0], [0], [1], [0, 0, 1, 1], [], []>} : vector<31x8xf32>, vector<8x8xf32>, vector<31x8xf32> -> vector<31x8xf32>
    %cst_63 = arith.constant dense<0.000000e+00> : vector<31x8xf32>
    %75 = tpu.matmul %68, %71, %cst_63 {dimension_numbers = #tpu.dot_dimension_numbers<[1], [0], [0], [1], [0, 0, 1, 1], [], []>} : vector<31x8xf32>, vector<8x8xf32>, vector<31x8xf32> -> vector<31x8xf32>
    %76 = arith.addf %74, %75 : vector<31x8xf32>
    %c2_64 = arith.constant 2 : index
    %c0_65 = arith.constant 0 : index
    %77 = vector.load %arg6[%c2_64, %c0_65] : memref<33x8xf32, #tpu.memory_space<vmem>>, vector<31x8xf32>
    %cst_66 = arith.constant dense<0.000000e+00> : vector<31x8xf32>
    %78 = tpu.matmul %77, %72, %cst_66 {dimension_numbers = #tpu.dot_dimension_numbers<[1], [0], [0], [1], [0, 0, 1, 1], [], []>} : vector<31x8xf32>, vector<8x8xf32>, vector<31x8xf32> -> vector<31x8xf32>
    %79 = arith.addf %76, %78 : vector<31x8xf32>
    %c136 = arith.constant 136 : index
    %c0_67 = arith.constant 0 : index
    %80 = vector.load %arg2[%c136, %c0_67] : memref<144x16xf32, #tpu.memory_space<vmem>>, vector<1x8xf32>
    %c137 = arith.constant 137 : index
    %c0_68 = arith.constant 0 : index
    %81 = vector.load %arg2[%c137, %c0_68] : memref<144x16xf32, #tpu.memory_space<vmem>>, vector<1x8xf32>
    %82 = vector.broadcast %80 : vector<1x8xf32> to vector<31x8xf32>
    %83 = arith.mulf %79, %82 : vector<31x8xf32>
    %84 = vector.broadcast %81 : vector<1x8xf32> to vector<31x8xf32>
    %85 = arith.addf %83, %84 : vector<31x8xf32>
    %cst_69 = arith.constant 0.000000e+00 : f32
    %86 = vector.broadcast %cst_69 : f32 to vector<31x8xf32>
    %87 = arith.cmpf ogt, %85, %86 : vector<31x8xf32>
    %cst_70 = arith.constant 0.00999999977 : f32
    %88 = vector.broadcast %cst_70 : f32 to vector<31x8xf32>
    %89 = arith.mulf %88, %85 : vector<31x8xf32>
    %90 = arith.select %87, %85, %89 : vector<31x8xi1>, vector<31x8xf32>
    %91 = arith.addf %90, %42 : vector<31x8xf32>
    %cst_71 = arith.constant 0.000000e+00 : f32
    %92 = vector.broadcast %cst_71 : f32 to vector<31x8xf32>
    %93 = arith.cmpf ogt, %91, %92 : vector<31x8xf32>
    %cst_72 = arith.constant 0.00999999977 : f32
    %94 = vector.broadcast %cst_72 : f32 to vector<31x8xf32>
    %95 = arith.mulf %94, %91 : vector<31x8xf32>
    %96 = arith.select %93, %91, %95 : vector<31x8xi1>, vector<31x8xf32>
    %c1_73 = arith.constant 1 : index
    %c0_74 = arith.constant 0 : index
    %97 = vector.load %arg6[%c1_73, %c0_74] : memref<33x8xf32, #tpu.memory_space<vmem>>, vector<31x8xf32>
    tpu.vector_store %arg6[%c1_73, %c0_74], %96 {strides = array<i32>} : memref<33x8xf32, #tpu.memory_space<vmem>>, vector<31x8xf32>,
    %c60 = arith.constant 60 : index
    %c0_75 = arith.constant 0 : index
    %98 = vector.load %arg2[%c60, %c0_75] : memref<144x16xf32, #tpu.memory_space<vmem>>, vector<8x8xf32>
    %c68 = arith.constant 68 : index
    %c0_76 = arith.constant 0 : index
    %99 = vector.load %arg2[%c68, %c0_76] : memref<144x16xf32, #tpu.memory_space<vmem>>, vector<8x8xf32>
    %c76 = arith.constant 76 : index
    %c0_77 = arith.constant 0 : index
    %100 = vector.load %arg2[%c76, %c0_77] : memref<144x16xf32, #tpu.memory_space<vmem>>, vector<8x8xf32>
    %c0_78 = arith.constant 0 : index
    %c0_79 = arith.constant 0 : index
    %101 = vector.load %arg6[%c0_78, %c0_79] : memref<33x8xf32, #tpu.memory_space<vmem>>, vector<31x8xf32>
    %cst_80 = arith.constant dense<0.000000e+00> : vector<31x8xf32>
    %102 = tpu.matmul %101, %98, %cst_80 {dimension_numbers = #tpu.dot_dimension_numbers<[1], [0], [0], [1], [0, 0, 1, 1], [], []>} : vector<31x8xf32>, vector<8x8xf32>, vector<31x8xf32> -> vector<31x8xf32>
    %cst_81 = arith.constant dense<0.000000e+00> : vector<31x8xf32>
    %103 = tpu.matmul %96, %99, %cst_81 {dimension_numbers = #tpu.dot_dimension_numbers<[1], [0], [0], [1], [0, 0, 1, 1], [], []>} : vector<31x8xf32>, vector<8x8xf32>, vector<31x8xf32> -> vector<31x8xf32>
    %104 = arith.addf %102, %103 : vector<31x8xf32>
    %c2_82 = arith.constant 2 : index
    %c0_83 = arith.constant 0 : index
    %105 = vector.load %arg6[%c2_82, %c0_83] : memref<33x8xf32, #tpu.memory_space<vmem>>, vector<31x8xf32>
    %cst_84 = arith.constant dense<0.000000e+00> : vector<31x8xf32>
    %106 = tpu.matmul %105, %100, %cst_84 {dimension_numbers = #tpu.dot_dimension_numbers<[1], [0], [0], [1], [0, 0, 1, 1], [], []>} : vector<31x8xf32>, vector<8x8xf32>, vector<31x8xf32> -> vector<31x8xf32>
    %107 = arith.addf %104, %106 : vector<31x8xf32>
    %c138 = arith.constant 138 : index
    %c0_85 = arith.constant 0 : index
    %108 = vector.load %arg2[%c138, %c0_85] : memref<144x16xf32, #tpu.memory_space<vmem>>, vector<1x8xf32>
    %c139 = arith.constant 139 : index
    %c0_86 = arith.constant 0 : index
    %109 = vector.load %arg2[%c139, %c0_86] : memref<144x16xf32, #tpu.memory_space<vmem>>, vector<1x8xf32>
    %110 = vector.broadcast %108 : vector<1x8xf32> to vector<31x8xf32>
    %111 = arith.mulf %107, %110 : vector<31x8xf32>
    %112 = vector.broadcast %109 : vector<1x8xf32> to vector<31x8xf32>
    %113 = arith.addf %111, %112 : vector<31x8xf32>
    %cst_87 = arith.constant 0.000000e+00 : f32
    %114 = vector.broadcast %cst_87 : f32 to vector<31x8xf32>
    %115 = arith.cmpf ogt, %113, %114 : vector<31x8xf32>
    %cst_88 = arith.constant 0.00999999977 : f32
    %116 = vector.broadcast %cst_88 : f32 to vector<31x8xf32>
    %117 = arith.mulf %116, %113 : vector<31x8xf32>
    %118 = arith.select %115, %113, %117 : vector<31x8xi1>, vector<31x8xf32>
    %c1_89 = arith.constant 1 : index
    %c0_90 = arith.constant 0 : index
    %119 = vector.load %arg6[%c1_89, %c0_90] : memref<33x8xf32, #tpu.memory_space<vmem>>, vector<31x8xf32>
    tpu.vector_store %arg6[%c1_89, %c0_90], %118 {strides = array<i32>} : memref<33x8xf32, #tpu.memory_space<vmem>>, vector<31x8xf32>,
    %c84 = arith.constant 84 : index
    %c0_91 = arith.constant 0 : index
    %120 = vector.load %arg2[%c84, %c0_91] : memref<144x16xf32, #tpu.memory_space<vmem>>, vector<8x8xf32>
    %c92 = arith.constant 92 : index
    %c0_92 = arith.constant 0 : index
    %121 = vector.load %arg2[%c92, %c0_92] : memref<144x16xf32, #tpu.memory_space<vmem>>, vector<8x8xf32>
    %c100 = arith.constant 100 : index
    %c0_93 = arith.constant 0 : index
    %122 = vector.load %arg2[%c100, %c0_93] : memref<144x16xf32, #tpu.memory_space<vmem>>, vector<8x8xf32>
    %c0_94 = arith.constant 0 : index
    %c0_95 = arith.constant 0 : index
    %123 = vector.load %arg6[%c0_94, %c0_95] : memref<33x8xf32, #tpu.memory_space<vmem>>, vector<31x8xf32>
    %cst_96 = arith.constant dense<0.000000e+00> : vector<31x8xf32>
    %124 = tpu.matmul %123, %120, %cst_96 {dimension_numbers = #tpu.dot_dimension_numbers<[1], [0], [0], [1], [0, 0, 1, 1], [], []>} : vector<31x8xf32>, vector<8x8xf32>, vector<31x8xf32> -> vector<31x8xf32>
    %cst_97 = arith.constant dense<0.000000e+00> : vector<31x8xf32>
    %125 = tpu.matmul %118, %121, %cst_97 {dimension_numbers = #tpu.dot_dimension_numbers<[1], [0], [0], [1], [0, 0, 1, 1], [], []>} : vector<31x8xf32>, vector<8x8xf32>, vector<31x8xf32> -> vector<31x8xf32>
    %126 = arith.addf %124, %125 : vector<31x8xf32>
    %c2_98 = arith.constant 2 : index
    %c0_99 = arith.constant 0 : index
    %127 = vector.load %arg6[%c2_98, %c0_99] : memref<33x8xf32, #tpu.memory_space<vmem>>, vector<31x8xf32>
    %cst_100 = arith.constant dense<0.000000e+00> : vector<31x8xf32>
    %128 = tpu.matmul %127, %122, %cst_100 {dimension_numbers = #tpu.dot_dimension_numbers<[1], [0], [0], [1], [0, 0, 1, 1], [], []>} : vector<31x8xf32>, vector<8x8xf32>, vector<31x8xf32> -> vector<31x8xf32>
    %129 = arith.addf %126, %128 : vector<31x8xf32>
    %c140 = arith.constant 140 : index
    %c0_101 = arith.constant 0 : index
    %130 = vector.load %arg2[%c140, %c0_101] : memref<144x16xf32, #tpu.memory_space<vmem>>, vector<1x8xf32>
    %c141 = arith.constant 141 : index
    %c0_102 = arith.constant 0 : index
    %131 = vector.load %arg2[%c141, %c0_102] : memref<144x16xf32, #tpu.memory_space<vmem>>, vector<1x8xf32>
    %132 = vector.broadcast %130 : vector<1x8xf32> to vector<31x8xf32>
    %133 = arith.mulf %129, %132 : vector<31x8xf32>
    %134 = vector.broadcast %131 : vector<1x8xf32> to vector<31x8xf32>
    %135 = arith.addf %133, %134 : vector<31x8xf32>
    %cst_103 = arith.constant 0.000000e+00 : f32
    %136 = vector.broadcast %cst_103 : f32 to vector<31x8xf32>
    %137 = arith.cmpf ogt, %135, %136 : vector<31x8xf32>
    %cst_104 = arith.constant 0.00999999977 : f32
    %138 = vector.broadcast %cst_104 : f32 to vector<31x8xf32>
    %139 = arith.mulf %138, %135 : vector<31x8xf32>
    %140 = arith.select %137, %135, %139 : vector<31x8xi1>, vector<31x8xf32>
    %141 = arith.addf %140, %96 : vector<31x8xf32>
    %cst_105 = arith.constant 0.000000e+00 : f32
    %142 = vector.broadcast %cst_105 : f32 to vector<31x8xf32>
    %143 = arith.cmpf ogt, %141, %142 : vector<31x8xf32>
    %cst_106 = arith.constant 0.00999999977 : f32
    %144 = vector.broadcast %cst_106 : f32 to vector<31x8xf32>
    %145 = arith.mulf %144, %141 : vector<31x8xf32>
    %146 = arith.select %143, %141, %145 : vector<31x8xi1>, vector<31x8xf32>
    %c1_107 = arith.constant 1 : index
    %c0_108 = arith.constant 0 : index
    %147 = vector.load %arg6[%c1_107, %c0_108] : memref<33x8xf32, #tpu.memory_space<vmem>>, vector<31x8xf32>
    tpu.vector_store %arg6[%c1_107, %c0_108], %146 {strides = array<i32>} : memref<33x8xf32, #tpu.memory_space<vmem>>, vector<31x8xf32>,
    %cst_109 = arith.constant 5.000000e-01 : f32
    %148 = vector.broadcast %cst_109 : f32 to vector<1x16xf32>
    %149 = arith.mulf %2, %148 : vector<1x16xf32>
    %c1_110 = arith.constant 1 : index
    %c0_111 = arith.constant 0 : index
    %150 = tpu.strided_load %arg6[%c1_110, %c0_111] {strides = array<i32: 4, 1>} : memref<33x8xf32, #tpu.memory_space<vmem>>, vector<6x8xf32>
    %c2_112 = arith.constant 2 : index
    %c0_113 = arith.constant 0 : index
    %151 = tpu.strided_load %arg6[%c2_112, %c0_113] {strides = array<i32: 4, 1>} : memref<33x8xf32, #tpu.memory_space<vmem>>, vector<6x8xf32>
    %c108 = arith.constant 108 : index
    %c0_114 = arith.constant 0 : index
    %152 = vector.load %arg2[%c108, %c0_114] : memref<144x16xf32, #tpu.memory_space<vmem>>, vector<8x16xf32>
    %153 = arith.addf %150, %151 : vector<6x8xf32>
    %cst_115 = arith.constant dense<0.000000e+00> : vector<6x16xf32>
    %154 = tpu.matmul %153, %152, %cst_115 {dimension_numbers = #tpu.dot_dimension_numbers<[1], [0], [0], [1], [0, 0, 1, 1], [], []>} : vector<6x8xf32>, vector<8x16xf32>, vector<6x16xf32> -> vector<6x16xf32>
    %c3_116 = arith.constant 3 : index
    %c0_117 = arith.constant 0 : index
    %155 = tpu.strided_load %arg6[%c3_116, %c0_117] {strides = array<i32: 4, 1>} : memref<33x8xf32, #tpu.memory_space<vmem>>, vector<6x8xf32>
    %c4_118 = arith.constant 4 : index
    %c0_119 = arith.constant 0 : index
    %156 = tpu.strided_load %arg6[%c4_118, %c0_119] {strides = array<i32: 4, 1>} : memref<33x8xf32, #tpu.memory_space<vmem>>, vector<6x8xf32>
    %c116 = arith.constant 116 : index
    %c0_120 = arith.constant 0 : index
    %157 = vector.load %arg2[%c116, %c0_120] : memref<144x16xf32, #tpu.memory_space<vmem>>, vector<8x16xf32>
    %158 = arith.addf %155, %156 : vector<6x8xf32>
    %cst_121 = arith.constant dense<0.000000e+00> : vector<6x16xf32>
    %159 = tpu.matmul %158, %157, %cst_121 {dimension_numbers = #tpu.dot_dimension_numbers<[1], [0], [0], [1], [0, 0, 1, 1], [], []>} : vector<6x8xf32>, vector<8x16xf32>, vector<6x16xf32> -> vector<6x16xf32>
    %160 = arith.addf %154, %159 : vector<6x16xf32>
    %c5 = arith.constant 5 : index
    %c0_122 = arith.constant 0 : index
    %161 = tpu.strided_load %arg6[%c5, %c0_122] {strides = array<i32: 4, 1>} : memref<33x8xf32, #tpu.memory_space<vmem>>, vector<6x8xf32>
    %c6 = arith.constant 6 : index
    %c0_123 = arith.constant 0 : index
    %162 = tpu.strided_load %arg6[%c6, %c0_123] {strides = array<i32: 4, 1>} : memref<33x8xf32, #tpu.memory_space<vmem>>, vector<6x8xf32>
    %c124 = arith.constant 124 : index
    %c0_124 = arith.constant 0 : index
    %163 = vector.load %arg2[%c124, %c0_124] : memref<144x16xf32, #tpu.memory_space<vmem>>, vector<8x16xf32>
    %164 = arith.addf %161, %162 : vector<6x8xf32>
    %cst_125 = arith.constant dense<0.000000e+00> : vector<6x16xf32>
    %165 = tpu.matmul %164, %163, %cst_125 {dimension_numbers = #tpu.dot_dimension_numbers<[1], [0], [0], [1], [0, 0, 1, 1], [], []>} : vector<6x8xf32>, vector<8x16xf32>, vector<6x16xf32> -> vector<6x16xf32>
    %166 = arith.addf %160, %165 : vector<6x16xf32>
    %167 = vector.broadcast %149 : vector<1x16xf32> to vector<6x16xf32>
    %168 = arith.mulf %166, %167 : vector<6x16xf32>
    %169 = vector.broadcast %3 : vector<1x16xf32> to vector<6x16xf32>
    %170 = arith.addf %168, %169 : vector<6x16xf32>
    %c3_126 = arith.constant 3 : index
    %c0_127 = arith.constant 0 : index
    %171 = tpu.strided_load %arg6[%c3_126, %c0_127] {strides = array<i32: 4, 1>} : memref<33x8xf32, #tpu.memory_space<vmem>>, vector<6x8xf32>
    %c4_128 = arith.constant 4 : index
    %c0_129 = arith.constant 0 : index
    %172 = tpu.strided_load %arg6[%c4_128, %c0_129] {strides = array<i32: 4, 1>} : memref<33x8xf32, #tpu.memory_space<vmem>>, vector<6x8xf32>
    %c108_130 = arith.constant 108 : index
    %c0_131 = arith.constant 0 : index
    %173 = vector.load %arg2[%c108_130, %c0_131] : memref<144x16xf32, #tpu.memory_space<vmem>>, vector<8x16xf32>
    %174 = arith.addf %171, %172 : vector<6x8xf32>
    %cst_132 = arith.constant dense<0.000000e+00> : vector<6x16xf32>
    %175 = tpu.matmul %174, %173, %cst_132 {dimension_numbers = #tpu.dot_dimension_numbers<[1], [0], [0], [1], [0, 0, 1, 1], [], []>} : vector<6x8xf32>, vector<8x16xf32>, vector<6x16xf32> -> vector<6x16xf32>
    %c5_133 = arith.constant 5 : index
    %c0_134 = arith.constant 0 : index
    %176 = tpu.strided_load %arg6[%c5_133, %c0_134] {strides = array<i32: 4, 1>} : memref<33x8xf32, #tpu.memory_space<vmem>>, vector<6x8xf32>
    %c6_135 = arith.constant 6 : index
    %c0_136 = arith.constant 0 : index
    %177 = tpu.strided_load %arg6[%c6_135, %c0_136] {strides = array<i32: 4, 1>} : memref<33x8xf32, #tpu.memory_space<vmem>>, vector<6x8xf32>
    %c116_137 = arith.constant 116 : index
    %c0_138 = arith.constant 0 : index
    %178 = vector.load %arg2[%c116_137, %c0_138] : memref<144x16xf32, #tpu.memory_space<vmem>>, vector<8x16xf32>
    %179 = arith.addf %176, %177 : vector<6x8xf32>
    %cst_139 = arith.constant dense<0.000000e+00> : vector<6x16xf32>
    %180 = tpu.matmul %179, %178, %cst_139 {dimension_numbers = #tpu.dot_dimension_numbers<[1], [0], [0], [1], [0, 0, 1, 1], [], []>} : vector<6x8xf32>, vector<8x16xf32>, vector<6x16xf32> -> vector<6x16xf32>
    %181 = arith.addf %175, %180 : vector<6x16xf32>
    %c7 = arith.constant 7 : index
    %c0_140 = arith.constant 0 : index
    %182 = tpu.strided_load %arg6[%c7, %c0_140] {strides = array<i32: 4, 1>} : memref<33x8xf32, #tpu.memory_space<vmem>>, vector<6x8xf32>
    %c8_141 = arith.constant 8 : index
    %c0_142 = arith.constant 0 : index
    %183 = tpu.strided_load %arg6[%c8_141, %c0_142] {strides = array<i32: 4, 1>} : memref<33x8xf32, #tpu.memory_space<vmem>>, vector<6x8xf32>
    %c124_143 = arith.constant 124 : index
    %c0_144 = arith.constant 0 : index
    %184 = vector.load %arg2[%c124_143, %c0_144] : memref<144x16xf32, #tpu.memory_space<vmem>>, vector<8x16xf32>
    %185 = arith.addf %182, %183 : vector<6x8xf32>
    %cst_145 = arith.constant dense<0.000000e+00> : vector<6x16xf32>
    %186 = tpu.matmul %185, %184, %cst_145 {dimension_numbers = #tpu.dot_dimension_numbers<[1], [0], [0], [1], [0, 0, 1, 1], [], []>} : vector<6x8xf32>, vector<8x16xf32>, vector<6x16xf32> -> vector<6x16xf32>
    %187 = arith.addf %181, %186 : vector<6x16xf32>
    %188 = vector.broadcast %149 : vector<1x16xf32> to vector<6x16xf32>
    %189 = arith.mulf %187, %188 : vector<6x16xf32>
    %190 = vector.broadcast %3 : vector<1x16xf32> to vector<6x16xf32>
    %191 = arith.addf %189, %190 : vector<6x16xf32>
    %192 = arith.maximumf %170, %191 : vector<6x16xf32>
    %cst_146 = arith.constant 0.000000e+00 : f32
    %193 = vector.broadcast %cst_146 : f32 to vector<6x16xf32>
    %194 = arith.maximumf %192, %193 : vector<6x16xf32>
    %c64 = arith.constant 64 : index
    %c0_147 = arith.constant 0 : index
    %195 = vector.load %arg4[%c64, %c0_147] : memref<67x128xf32, #tpu.memory_space<vmem>>, vector<1x128xf32>
    %c0_148 = arith.constant 0 : index
    %c0_149 = arith.constant 0 : index
    %196 = vector.load %arg3[%c0_148, %c0_149] : memref<224x128xbf16, #tpu.memory_space<vmem>>, vector<16x128xbf16>
    %197 = arith.extf %196 : vector<16x128xbf16> to vector<16x128xf32>
    %198 = vector.extract_strided_slice %194 {offsets = [0, 0], sizes = [1, 16], strides = [1, 1]} : vector<6x16xf32> to vector<1x16xf32>
    %cst_150 = arith.constant dense<0.000000e+00> : vector<1x128xf32>
    %199 = tpu.matmul %198, %197, %cst_150 {dimension_numbers = #tpu.dot_dimension_numbers<[1], [0], [0], [1], [0, 0, 1, 1], [], []>} : vector<1x16xf32>, vector<16x128xf32>, vector<1x128xf32> -> vector<1x128xf32>
    %200 = arith.addf %195, %199 : vector<1x128xf32>
    %c16 = arith.constant 16 : index
    %c0_151 = arith.constant 0 : index
    %201 = vector.load %arg3[%c16, %c0_151] : memref<224x128xbf16, #tpu.memory_space<vmem>>, vector<16x128xbf16>
    %202 = arith.extf %201 : vector<16x128xbf16> to vector<16x128xf32>
    %203 = vector.extract_strided_slice %194 {offsets = [1, 0], sizes = [1, 16], strides = [1, 1]} : vector<6x16xf32> to vector<1x16xf32>
    %cst_152 = arith.constant dense<0.000000e+00> : vector<1x128xf32>
    %204 = tpu.matmul %203, %202, %cst_152 {dimension_numbers = #tpu.dot_dimension_numbers<[1], [0], [0], [1], [0, 0, 1, 1], [], []>} : vector<1x16xf32>, vector<16x128xf32>, vector<1x128xf32> -> vector<1x128xf32>
    %205 = arith.addf %200, %204 : vector<1x128xf32>
    %c32_153 = arith.constant 32 : index
    %c0_154 = arith.constant 0 : index
    %206 = vector.load %arg3[%c32_153, %c0_154] : memref<224x128xbf16, #tpu.memory_space<vmem>>, vector<16x128xbf16>
    %207 = arith.extf %206 : vector<16x128xbf16> to vector<16x128xf32>
    %208 = vector.extract_strided_slice %194 {offsets = [2, 0], sizes = [1, 16], strides = [1, 1]} : vector<6x16xf32> to vector<1x16xf32>
    %cst_155 = arith.constant dense<0.000000e+00> : vector<1x128xf32>
    %209 = tpu.matmul %208, %207, %cst_155 {dimension_numbers = #tpu.dot_dimension_numbers<[1], [0], [0], [1], [0, 0, 1, 1], [], []>} : vector<1x16xf32>, vector<16x128xf32>, vector<1x128xf32> -> vector<1x128xf32>
    %210 = arith.addf %205, %209 : vector<1x128xf32>
    %c48 = arith.constant 48 : index
    %c0_156 = arith.constant 0 : index
    %211 = vector.load %arg3[%c48, %c0_156] : memref<224x128xbf16, #tpu.memory_space<vmem>>, vector<16x128xbf16>
    %212 = arith.extf %211 : vector<16x128xbf16> to vector<16x128xf32>
    %213 = vector.extract_strided_slice %194 {offsets = [3, 0], sizes = [1, 16], strides = [1, 1]} : vector<6x16xf32> to vector<1x16xf32>
    %cst_157 = arith.constant dense<0.000000e+00> : vector<1x128xf32>
    %214 = tpu.matmul %213, %212, %cst_157 {dimension_numbers = #tpu.dot_dimension_numbers<[1], [0], [0], [1], [0, 0, 1, 1], [], []>} : vector<1x16xf32>, vector<16x128xf32>, vector<1x128xf32> -> vector<1x128xf32>
    %215 = arith.addf %210, %214 : vector<1x128xf32>
    %c64_158 = arith.constant 64 : index
    %c0_159 = arith.constant 0 : index
    %216 = vector.load %arg3[%c64_158, %c0_159] : memref<224x128xbf16, #tpu.memory_space<vmem>>, vector<16x128xbf16>
    %217 = arith.extf %216 : vector<16x128xbf16> to vector<16x128xf32>
    %218 = vector.extract_strided_slice %194 {offsets = [4, 0], sizes = [1, 16], strides = [1, 1]} : vector<6x16xf32> to vector<1x16xf32>
    %cst_160 = arith.constant dense<0.000000e+00> : vector<1x128xf32>
    %219 = tpu.matmul %218, %217, %cst_160 {dimension_numbers = #tpu.dot_dimension_numbers<[1], [0], [0], [1], [0, 0, 1, 1], [], []>} : vector<1x16xf32>, vector<16x128xf32>, vector<1x128xf32> -> vector<1x128xf32>
    %220 = arith.addf %215, %219 : vector<1x128xf32>
    %c80 = arith.constant 80 : index
    %c0_161 = arith.constant 0 : index
    %221 = vector.load %arg3[%c80, %c0_161] : memref<224x128xbf16, #tpu.memory_space<vmem>>, vector<16x128xbf16>
    %222 = arith.extf %221 : vector<16x128xbf16> to vector<16x128xf32>
    %223 = vector.extract_strided_slice %194 {offsets = [5, 0], sizes = [1, 16], strides = [1, 1]} : vector<6x16xf32> to vector<1x16xf32>
    %cst_162 = arith.constant dense<0.000000e+00> : vector<1x128xf32>
    %224 = tpu.matmul %223, %222, %cst_162 {dimension_numbers = #tpu.dot_dimension_numbers<[1], [0], [0], [1], [0, 0, 1, 1], [], []>} : vector<1x16xf32>, vector<16x128xf32>, vector<1x128xf32> -> vector<1x128xf32>
    %225 = arith.addf %220, %224 : vector<1x128xf32>
    %cst_163 = arith.constant 0.000000e+00 : f32
    %226 = vector.broadcast %cst_163 : f32 to vector<1x128xf32>
    %227 = arith.maximumf %225, %226 : vector<1x128xf32>
    %c96 = arith.constant 96 : index
    %c0_164 = arith.constant 0 : index
    %228 = vector.load %arg3[%c96, %c0_164] : memref<224x128xbf16, #tpu.memory_space<vmem>>, vector<128x64xbf16>
    %229 = arith.extf %228 : vector<128x64xbf16> to vector<128x64xf32>
    %cst_165 = arith.constant dense<0.000000e+00> : vector<1x64xf32>
    %230 = tpu.matmul %227, %229, %cst_165 {dimension_numbers = #tpu.dot_dimension_numbers<[1], [0], [0], [1], [0, 0, 1, 1], [], []>} : vector<1x128xf32>, vector<128x64xf32>, vector<1x64xf32> -> vector<1x64xf32>
    %c65 = arith.constant 65 : index
    %c0_166 = arith.constant 0 : index
    %231 = vector.load %arg4[%c65, %c0_166] : memref<67x128xf32, #tpu.memory_space<vmem>>, vector<1x64xf32>
    %232 = arith.addf %230, %231 : vector<1x64xf32>
    %cst_167 = arith.constant 0.000000e+00 : f32
    %233 = vector.broadcast %cst_167 : f32 to vector<1x64xf32>
    %234 = arith.maximumf %232, %233 : vector<1x64xf32>
    %c0_168 = arith.constant 0 : index
    %c0_169 = arith.constant 0 : index
    %235 = vector.load %arg4[%c0_168, %c0_169] : memref<67x128xf32, #tpu.memory_space<vmem>>, vector<64x128xf32>
    %cst_170 = arith.constant dense<0.000000e+00> : vector<1x128xf32>
    %236 = tpu.matmul %234, %235, %cst_170 {dimension_numbers = #tpu.dot_dimension_numbers<[1], [0], [0], [1], [0, 0, 1, 1], [], []>} : vector<1x64xf32>, vector<64x128xf32>, vector<1x128xf32> -> vector<1x128xf32>
    %c66 = arith.constant 66 : index
    %c0_171 = arith.constant 0 : index
    %237 = vector.load %arg4[%c66, %c0_171] : memref<67x128xf32, #tpu.memory_space<vmem>>, vector<1x128xf32>
    %238 = arith.addf %236, %237 : vector<1x128xf32>
    %cst_172 = arith.constant 0.000000e+00 : f32
    %239 = vector.broadcast %cst_172 : f32 to vector<1x128xf32>
    %240 = arith.maximumf %238, %239 : vector<1x128xf32>
    %c0_173 = arith.constant 0 : index
    %c0_174 = arith.constant 0 : index
    %c0_175 = arith.constant 0 : index
    %241 = vector.load %arg5[%c0_173, %c0_174, %c0_175] : memref<1x1x128xf32, #tpu.memory_space<vmem>>, vector<1x1x128xf32>
    %242 = vector.shape_cast %241 : vector<1x1x128xf32> to vector<1x128xf32>
    %243 = vector.shape_cast %240 : vector<1x128xf32> to vector<1x1x128xf32>
    tpu.vector_store %arg5[%c0_173, %c0_174, %c0_175], %243 {strides = array<i32>} : memref<1x1x128xf32, #tpu.memory_space<vmem>>, vector<1x1x128xf32>,
    return
  }
  func.func @transform_0(%arg0: i32) -> (i32, i32, i32) {
    %c0_i32 = arith.constant 0 : i32
    %c0_i32_0 = arith.constant 0 : i32
    %c0_i32_1 = arith.constant 0 : i32
    return %arg0, %c0_i32, %c0_i32_0 : i32, i32, i32
  }
  func.func @transform_1(%arg0: i32) -> (i32, i32) {
    %c0_i32 = arith.constant 0 : i32
    %c0_i32_0 = arith.constant 0 : i32
    %c0_i32_1 = arith.constant 0 : i32
    return %c0_i32, %c0_i32_0 : i32, i32
  }
  func.func @transform_2(%arg0: i32) -> (i32, i32) {
    %c0_i32 = arith.constant 0 : i32
    %c0_i32_0 = arith.constant 0 : i32
    %c0_i32_1 = arith.constant 0 : i32
    return %c0_i32, %c0_i32_0 : i32, i32
  }
  func.func @transform_3(%arg0: i32) -> (i32, i32) {
    %c0_i32 = arith.constant 0 : i32
    %c0_i32_0 = arith.constant 0 : i32
    %c0_i32_1 = arith.constant 0 : i32
    return %c0_i32, %c0_i32_0 : i32, i32
  }
  func.func @transform_4(%arg0: i32) -> (i32, i32, i32) {
    %c0_i32 = arith.constant 0 : i32
    %c0_i32_0 = arith.constant 0 : i32
    %c0_i32_1 = arith.constant 0 : i32
    return %arg0, %c0_i32, %c0_i32_0 : i32, i32, i32
  }
}

</mosaic_0001>

<bundles_post_ra>
// kernel: mtan_cnn_forward.1
= control target key start
LH: loop header
LB: loop body
LE: loop exit
PB: predicated region body
PF: predicated region fallthrough
CT: control target
= control target key end

     0   :  { %9 = vsyncpa [#allocation4], 0  ;;  %s4808_s0 = inlined_call_operand.vmem [shape: f32[2,64,4], index: 0, kind: input, shape index: {}]   ;;  %s4809_s1 = inlined_call_operand.vmem [shape: f32[144,16], index: 1, kind: input, shape index: {}]   ;;  %s4810_s2 = inlined_call_operand.vmem [shape: bf16[224,128], index: 2, kind: input, shape index: {}]   ;;  %s4811_s3 = inlined_call_operand.vmem [shape: f32[67,128], index: 3, kind: input, shape index: {}]   ;;  %s4812_s4 = inlined_call_operand.hbm [shape: f32[2,1,128], index: 4, kind: output, shape index: {}]  }
   0x1   :  { %11 = vsyncpa [#allocation4 + $0x1], 0  ;;  %s4313_s15 = smov 0   ;;  %s4315_s16 = smov 0  }
   0x2   :  { %s4317_s17 = smov 0   ;;  %s4319_s18 = smov 0  }
   0x3 LB: > { %s4334_s19 = sadd.s32 4294967295, %s4282_s18   ;;  %s3443_s20 = sadd.s32 4294967294, %s4282_s18   ;;  %s4282_s18 = sphi %s4319_s18, %s4818_s18   ;;  %s4278_s17 = sphi %s4317_s17, %s4817_s17   ;;  %s4274_s16 = sphi %s4315_s16, %s4816_s16   ;;  %s4270_s15 = sphi %s4313_s15, %s4815_s15  }
   0x4   : > { %s4338_s21 = sadd.s32 1, %s4282_s18   ;;  %s113_s22 = sadd.s32 1, %s4278_s17 }
   0x5   : > { %s110_s23 = ssub.s32 %s4282_s18, %s4338_s21  ;;  %p123_p0 = scmp.ne.s32.totalorder %s4278_s17, %s4274_s16 }
   0x6   : > { %p111_p1 = scmp.eq.s32.totalorder %s110_s23, 0  ;;  %p124_p2 = scmp.eq.s32.totalorder %s4334_s19, 1 }
   0x7   : > { %p129_p3 = scmp.ne.s32.totalorder %s4274_s16, %s4270_s15  ;;  %p130_p4 = scmp.eq.s32.totalorder %s3443_s20, 1 }
   0x8   : > { %s4349_s24 = scalar_select %p111_p1, %s4278_s17, %s113_s22  }
   0x9   : > { %p4351_p5 = por %p124_p2, %p123_p0  ;;  %p4355_p6 = por %p130_p4, %p129_p3 }
   0xa   : > { %p3446_p7 = scmp.ge.s32.totalorder %s4282_s18, 1  ;;  %p165_p8 = scmp.lt.s32.totalorder %s4282_s18, 3 }
   0xc   : > { %p166_p9 = pnand %p3446_p7, %p165_p8 }
   0xd   : > { %v215_v0 = vld [vmem:[%s4809_s1 + $0x4] sm:$0xf] (!%p166_p9)  ;;  %vm229_vm0 = vcmask (!%p166_p9), 1043456   ;;  %p190_p10 = scmp.lt.s32.totalorder (!%p166_p9), %s4334_s19, 1  ;;  %v206_v1 = vld [vmem:[%s4809_s1] sm:$0xf] (!%p166_p9) }
   0xe   : > { %169 = sbr.rel (%p166_p9) target bundleno = 2180 (0x884), region = 36  ;;  %4109 = vmatprep.subr.msk.mxu1 (!%p166_p9), %vm229_vm0, %v215_v0  ;;  %3785 = vmatprep.subr.msk.mxu0 (!%p166_p9), %vm229_vm0, %v215_v0  ;;  %vm216_vm1 = vcmask (!%p166_p9), 31744   ;;  %v426_v8 = vld [vmem:[%s4809_s1 + $0x8] sm:$0xf] (!%p166_p9)  ;;  %v852_v19 = vld [vmem:[%s4809_s1 + $0x14] sm:$0xff] (!%p166_p9)  ;;  %vm842_vm2 = vcmask (!%p166_p9), 57344  }
   0xf   : > { %4110 = vmatpush3.msk.msra.mxu1 (!%p166_p9), %vm229_vm0, %v215_v0  ;;  %3786 = vmatpush3.msk.msra.mxu0 (!%p166_p9), %vm229_vm0, %v215_v0  ;;  %v4284_v20 = vmov (!%p166_p9), 0.0   ;;  %v851_v21 = vld [vmem:[%s4809_s1 + $0xc] sm:$0xff] (!%p166_p9)  ;;  %v3475_v24 = vld [vmem:[%s4809_s1 + $0x84] ss:$0 sm:$0xff] (!%p166_p9)  ;;  %v3476_v28 = vld [vmem:[%s4809_s1 + $0x85] ss:$0 sm:$0xff] (!%p166_p9) }
  0x10   : > { %3809 = vmatprep.subr.msk.mxu1 (!%p166_p9), %vm229_vm0, %v215_v0  ;;  %3793 = vmatprep.subr.msk.mxu0 (!%p166_p9), %vm229_vm0, %v206_v1  ;;  %843 = vst.msk [vmem:[#allocation2] sm:$0x1] (!%p166_p9), %vm842_vm2, %v4284_v20  ;;  %844 = vst.msk [vmem:[#allocation2 + $0x20] sm:$0x1] (!%p166_p9), %vm842_vm2, %v4284_v20  ;;  %vm845_vm3 = vcmask (!%p166_p9), 64512   ;;  %vm849_vm4 = vcmask (!%p166_p9), 63488  }
  0x11   : > { %v853_v58 = vld [vmem:[%s4809_s1 + $0x1c] sm:$0xff] (!%p166_p9)  ;;  %s188_s12 = sand.u32 (!%p166_p9), 1, %s4274_s16   ;;  %s3566_s20 = sshll.u32 (!%p166_p9), %s4334_s19, 4 }
  0x12   : > { %s189_s22 = scalar_lea.vmem (!%p166_p9), [#allocation3], %s188_s12  ;;  %s4766_s29 = scalar_lea.hbm (!%p166_p9), %s4812_s4, %s3566_s20 }
  0x13   : > { %s3388_s23 = sshll.u32 (!%p166_p9), %s189_s22, 4  ;;  %s3376_s30 = scalar_lea.sflag (!%p166_p9), [#allocation4], %s188_s12  ;;  %s4768_s23 = int_to_ptr.vmem [resolvable:$true] %s3388_s23 }
  0x15   : > { %s191_s5 = scalar_select %p190_p10, %s4334_s19, 1 }
  0x16   : > { %s4287_s19 = smov [#allocation3]  }
  0x17   : > { %s3569_s6 = sshll.u32 %s191_s5, 6  ;;  %s4220_s5 = scalar_lea.vmem %s4768_s23, 16 }
  0x18   : > { %s4378_s9 = scalar_lea.vmem %s4808_s0, %s3569_s6  ;;  %p4221_p11 = scmp.ne.s32.totalorder %s4768_s23, %s4220_s5 }
  0x19   : > { %v3452_v2 = vld [vmem:[%s4378_s9 + $0x1] ss:$2 sm:$0xff]  ;;  %v3453_v4 = vld [vmem:[%s4378_s9 + $0x11] ss:$2 sm:$0xff]  ;;  %v3466_v6 = vld [vmem:[%s4378_s9 + $0x2] ss:$2 sm:$0xff] }
  0x1a   : > { %v3454_v3 = vld [vmem:[%s4378_s9 + $0x21] ss:$2 sm:$0xff]  ;;  %3787 = vmatprep.mubr.msk.f32.mxu0 %vm216_vm1, %v3452_v2  ;;  %v3455_v5 = vld [vmem:[%s4378_s9 + $0x31] ss:$2 sm:$0x7f]  ;;  %p4222_p12 = pnand %p4221_p11, %p4351_p5  ;;  %s4224_s6 = sshll.u32 %s4287_s19, 4  ;;  %s4225_s6 = int_to_ptr.vmem [resolvable:$false] %s4224_s6 }
  0x1b   : > { %3790 = vmatprep.mubr.msk.f32.mxu1 %vm216_vm1, %v3454_v3  ;;  %3788 = vmatmul.mubr.msk.f32.vlgmr.msra.gmra.mrb[0].mxu0 %vm216_vm1, %v3453_v4  ;;  %v199_v7 = vld [vmem:[%s4378_s9] ss:$2 sm:$0xff]  ;;  %v3449_v11 = vld [vmem:[%s4378_s9 + $0x10] ss:$2 sm:$0xff]  ;;  %v3487_v15 = vld [vmem:[%s4378_s9 + $0x3] ss:$2 sm:$0xff]  ;;  %p4227_p0 = scmp.lt.s32.totalorder %s4768_s23, %s4225_s6 }
  0x1c   : > { %3791 = vmatmul.mubr.msk.f32.vlgmr.msra.gmra.mrb[0].mxu1 %vm216_vm1, %v3455_v5  ;;  %3794 = vmatpush3.msk.msra.mxu0 %vm229_vm0, %v206_v1  ;;  %v3467_v9 = vld [vmem:[%s4378_s9 + $0x12] ss:$2 sm:$0xff]  ;;  %v3468_v10 = vld [vmem:[%s4378_s9 + $0x22] ss:$2 sm:$0xff]  ;;  %v3488_v16 = vld [vmem:[%s4378_s9 + $0x13] ss:$2 sm:$0xff]  ;;  %p4223_p13 = pneg %p4222_p12 }
  0x1d   : > { %3810 = vmatpush3.msk.msra.mxu1 %vm229_vm0, %v215_v0  ;;  %3811 = vmatprep.mubr.msk.f32.mxu1 %vm216_vm1, %v3466_v6  ;;  %v3469_v12 = vld [vmem:[%s4378_s9 + $0x32] ss:$2 sm:$0x7f]  ;;  %v3450_v13 = vld [vmem:[%s4378_s9 + $0x20] ss:$2 sm:$0xff]  ;;  %s4226_s7 = scalar_lea.vmem %s4225_s6, 32 }
  0x1e   : > { %3817 = vmatprep.subr.msk.mxu1 %vm229_vm0, %v206_v1  ;;  %3795 = vmatprep.mubr.msk.f32.mxu0 %vm216_vm1, %v199_v7  ;;  %v3451_v14 = vld [vmem:[%s4378_s9 + $0x30] ss:$2 sm:$0x7f]  ;;  %v3489_v17 = vld [vmem:[%s4378_s9 + $0x23] ss:$2 sm:$0xff]  ;;  %p4228_p1 = scmp.lt.s32.totalorder %s4226_s7, %s4220_s5 }
  0x1f   : > { %3801 = vmatprep.subr.msk.mxu0 %vm229_vm0, %v426_v8  ;;  %v3490_v18 = vld [vmem:[%s4378_s9 + $0x33] ss:$2 sm:$0x7f]  ;;  %v3508_v7 = vld [vmem:[%s4809_s1 + $0x86] ss:$0 sm:$0xff] }
  0x20   : > { %3812 = vmatmul.mubr.msk.f32.vlgmr.msra.gmra.mrb[2].mxu1 %vm216_vm1, %v3467_v9  ;;  %p4229_p2 = por %p4228_p1, %p4227_p0 }
  0x21   : > { %3818 = vmatpush3.msk.msra.mxu1 %vm229_vm0, %v206_v1  ;;  %3814 = vmatprep.mubr.msk.f32.mxu1 %vm216_vm1, %v3468_v10 }
  0x22   : > { %3825 = vmatprep.subr.msk.mxu1 %vm229_vm0, %v426_v8  ;;  %p4230_p3 = pnand %p4229_p2, %p4223_p13 }
  0x23   : > { %3796 = vmatmul.mubr.msk.f32.vlgmr.msra.gmra.mrb[0].mxu0 %vm216_vm1, %v3449_v11 }
  0x24   : > { %3815 = vmatmul.mubr.msk.f32.gmra.mrb[4].mxu1 %vm216_vm1, %v3469_v12  ;;  %3802 = vmatpush3.msk.msra.mxu0 %vm229_vm0, %v426_v8 }
  0x25   : > { %3798 = vmatprep.mubr.msk.f32.mxu0 %vm216_vm1, %v3450_v13  ;;  %3819 = vmatprep.mubr.msk.f32.mxu1 %vm216_vm1, %v3452_v2 }
  0x26   : > { %3833 = vmatprep.subr.mxu0 %v852_v19 }
  0x27   : > { %3799 = vmatmul.mubr.msk.f32.gmra.mrb[2].mxu0 %vm216_vm1, %v3451_v14 }
  0x28   : > { %3820 = vmatmul.mubr.msk.f32.vlgmr.msra.gmra.mrb[2].mxu1 %vm216_vm1, %v3453_v4  ;;  %3803 = vmatprep.mubr.msk.f32.mxu0 %vm216_vm1, %v3466_v6  ;;  %v1191_v6 = vld [vmem:[%s4809_s1 + $0x24] sm:$0xff] }
  0x29   : > { %3826 = vmatpush3.msk.msra.mxu1 %vm229_vm0, %v426_v8  ;;  %3822 = vmatprep.mubr.msk.f32.mxu1 %vm216_vm1, %v3454_v3 }
  0x2b   : > { %3804 = vmatmul.mubr.msk.f32.vlgmr.msra.gmra.mrb[0].mxu0 %vm216_vm1, %v3467_v9  ;;  %v3509_v9 = vld [vmem:[%s4809_s1 + $0x87] ss:$0 sm:$0xff] }
  0x2c   : > { %3823 = vmatmul.mubr.msk.f32.gmra.mrb[4].mxu1 %vm216_vm1, %v3455_v5  ;;  %3806 = vmatprep.mubr.msk.f32.mxu0 %vm216_vm1, %v3468_v10  ;;  %v1192_v5 = vld [vmem:[%s4809_s1 + $0x2c] sm:$0xff] }
  0x2d   : > { %3827 = vmatprep.mubr.msk.f32.mxu1 %vm216_vm1, %v3487_v15  ;;  %3834 = vmatpush3.msra.mxu0 %v852_v19 }
  0x2e   : > { %3841 = vmatprep.subr.mxu0 %v851_v21  ;;  %3857 = vmatprep.subr.mxu1 %v1192_v5 }
  0x2f   : > { %3807 = vmatmul.mubr.msk.f32.gmra.mrb[2].mxu0 %vm216_vm1, %v3469_v12 }
  0x30   : > { %3828 = vmatmul.mubr.msk.f32.vlgmr.msra.gmra.mrb[2].mxu1 %vm216_vm1, %v3488_v16 }
  0x31   : > { %3830 = vmatprep.mubr.msk.f32.mxu1 %vm216_vm1, %v3489_v17  ;;  %3858 = vmatpush3.msra.mxu1 %v1192_v5 }
  0x32   : > { %3865 = vmatprep.subr.mxu1 %v1191_v6 }
  0x34   : > { %3831 = vmatmul.mubr.msk.f32.gmra.mrb[4].mxu1 %vm216_vm1, %v3490_v18 }
  0xef   : > { %v3792_v22 = vpop.f32.mrb[0].mxu1 }
  0xf0   : > { %v309_v23 = vpop.f32.mrb[1].mxu1 }
  0xfe   : > { %v3805_v25 = vpop.f32.mrb[0].mxu0 }
  0xff   : > { %v508_v26 = vpop.f32.mrb[1].mxu0  ;;  %v536_v27 = vmul.f32 %v3805_v25, %v3475_v24 }
 0x100   : > { %v535_v29 = vmul.f32 %v3475_v24, %v508_v26 }
 0x101   : > { %v544_v38 = vadd.f32 %v3476_v28, %v536_v27  ;;  %v1193_v27 = vld [vmem:[%s4809_s1 + $0x34] sm:$0xff] }
 0x102   : > { %v3808_v30 = vpop.f32.mrb[2].mxu0  ;;  %v543_v41 = vadd.f32 %v3476_v28, %v535_v29 }
 0x103   : > { %v3829_v31 = vpop.f32.mrb[2].mxu1  ;;  %v4111_v32 = vadd.f32 %v3808_v30, %v3792_v22  ;;  %v518_v34 = vpop.f32.mrb[3].mxu0 }
 0x104   : > { %v827_v33 = vmul.f32 %v3829_v31, %v3475_v24  ;;  %v803_v35 = vpop.f32.mrb[3].mxu1  ;;  %v4112_v36 = vadd.f32 %v518_v34, %v309_v23 }
 0x105   : > { %v826_v37 = vmul.f32 %v3475_v24, %v803_v35  ;;  %v538_v39 = vmul.f32 %v4111_v32, %v3475_v24 }
 0x106   : > { %v831_v40 = vadd.f32 %v3476_v28, %v827_v33  ;;  %v537_v42 = vmul.f32 %v4112_v36, %v3475_v24 }
 0x107   : > { %v830_v43 = vadd.f32 %v3476_v28, %v826_v37  ;;  %v3832_v44 = vpop.f32.mrb[4].mxu1  ;;  %v546_v50 = vadd.f32 %v3476_v28, %v538_v39  ;;  %v1548_v39 = vld [vmem:[%s4809_s1 + $0x44] sm:$0xff] }
 0x108   : > { %v835_v45 = vmax.f32 %v544_v38, %v831_v40  ;;  %v829_v46 = vmul.f32 %v3832_v44, %v3475_v24  ;;  %v813_v47 = vpop.f32.mrb[5].mxu1  ;;  %v545_v53 = vadd.f32 %v3476_v28, %v537_v42  ;;  %v1547_v40 = vld [vmem:[%s4809_s1 + $0x3c] sm:$0xff] }
 0x109   : > { %v834_v48 = vmax.f32 %v543_v41, %v830_v43  ;;  %v828_v49 = vmul.f32 %v3475_v24, %v813_v47  ;;  %v3522_v41 = vld [vmem:[%s4809_s1 + $0x88] ss:$0 sm:$0xff]  ;;  %v3523_v43 = vld [vmem:[%s4809_s1 + $0x89] ss:$0 sm:$0xff] }
 0x10a   : > { %v4445_v51 = vmax.f32 %v835_v45, 0.0  ;;  %v833_v52 = vadd.f32 %v3476_v28, %v829_v46 }
 0x10b   : > { %v4447_v54 = vmax.f32 %v834_v48, 0.0  ;;  %v832_v55 = vadd.f32 %v3476_v28, %v828_v49 }
 0x10c   : > { %847 = vst.msk [vmem:[#allocation2 + $0x9] sm:$0xff] %vm845_vm3, %v4445_v51  ;;  %v837_v56 = vmax.f32 %v546_v50, %v833_v52 }
 0x10d   : > { %846 = vst.msk [vmem:[#allocation2 + $0x1] sm:$0xff] %vm845_vm3, %v4447_v54  ;;  %v836_v57 = vmax.f32 %v545_v53, %v832_v55  ;;  %3835 = vmatprep.mubr.msk.f32.mxu0 %vm845_vm3, %v4447_v54 }
 0x10e   : > { %v4458_v59 = vmax.f32 %v837_v56, 0.0  ;;  %3836 = vmatmul.mubr.msk.f32.vlgmr.msra.gmra.mrb[4].mxu0 %vm845_vm3, %v4445_v51 }
 0x10f   : > { %v4462_v60 = vmax.f32 %v836_v57, 0.0  ;;  %3842 = vmatpush3.msra.mxu0 %v851_v21 }
 0x110   : > { %850 = vst.msk [vmem:[#allocation2 + $0x19] sm:$0x7f] %vm849_vm4, %v4458_v59  ;;  %3849 = vmatprep.subr.mxu0 %v853_v58 }
 0x111   : > { %848 = vst.msk [vmem:[#allocation2 + $0x11] sm:$0xff] %vm845_vm3, %v4462_v60  ;;  %3838 = vmatprep.mubr.msk.f32.mxu0 %vm845_vm3, %v4462_v60 }
 0x112   : > { %3839 = vmatmul.mubr.msk.f32.gmra.mrb[6].mxu0 %vm845_vm3, %v4458_v59 }
 0x114   : > { %v854_v61 = vld [vmem:[#allocation2] sm:$0xff]  ;;  %v855_v62 = vld [vmem:[#allocation2 + $0x8] sm:$0xff] }
 0x115   : > { %3843 = vmatprep.mubr.msk.f32.mxu0 %vm845_vm3, %v854_v61  ;;  %v1052_v1 = vld [vmem:[#allocation2 + $0x2] sm:$0xff] }
 0x116   : > { %3844 = vmatmul.mubr.msk.f32.vlgmr.msra.gmra.mrb[4].mxu0 %vm845_vm3, %v855_v62 }
 0x117   : > { %3850 = vmatpush3.msra.mxu0 %v853_v58  ;;  %v1055_v4 = vld [vmem:[#allocation2 + $0x1a] sm:$0x7f] }
 0x118   : > { %v856_v63 = vld [vmem:[#allocation2 + $0x10] sm:$0xff]  ;;  %v857_v0 = vld [vmem:[#allocation2 + $0x18] sm:$0x7f]  ;;  %3881 = vmatprep.subr.mxu0 %v1548_v39 }
 0x119   : > { %3846 = vmatprep.mubr.msk.f32.mxu0 %vm845_vm3, %v856_v63  ;;  %v1053_v2 = vld [vmem:[#allocation2 + $0xa] sm:$0xff]  ;;  %v1054_v3 = vld [vmem:[#allocation2 + $0x12] sm:$0xff] }
 0x11a   : > { %3847 = vmatmul.mubr.msk.f32.gmra.mrb[6].mxu0 %vm845_vm3, %v857_v0 }
 0x11b   : > { %3851 = vmatprep.mubr.msk.f32.mxu0 %vm845_vm3, %v1052_v1 }
 0x11e   : > { %3852 = vmatmul.mubr.msk.f32.vlgmr.msra.gmra.mrb[4].mxu0 %vm845_vm3, %v1053_v2 }
 0x11f   : > { %3854 = vmatprep.mubr.msk.f32.mxu0 %vm845_vm3, %v1054_v3  ;;  %3882 = vmatpush3.msra.mxu0 %v1548_v39 }
 0x120   : > { %3889 = vmatprep.subr.mxu0 %v1547_v40 }
 0x122   : > { %3855 = vmatmul.mubr.msk.f32.gmra.mrb[6].mxu0 %vm845_vm3, %v1055_v4 }
 0x1f1   : > { %v3853_v8 = vpop.f32.mrb[4].mxu0 }
 0x1f2   : > { %v1164_v10 = vmul.f32 %v3853_v8, %v3508_v7  ;;  %v1134_v11 = vpop.f32.mrb[5].mxu0 }
 0x1f3   : > { %v1163_v12 = vmul.f32 %v3508_v7, %v1134_v11 }
 0x1f4   : > { %v1172_v13 = vadd.f32 %v3509_v9, %v1164_v10  ;;  %v1549_v10 = vld [vmem:[%s4809_s1 + $0x4c] sm:$0xff] }
 0x1f5   : > { %v1171_v14 = vadd.f32 %v3509_v9, %v1163_v12  ;;  %v3856_v15 = vpop.f32.mrb[6].mxu0 }
 0x1f6   : > { %vm1176_vm5 = vcmp.gt.f32.partialorder %v1172_v13, 0.0  ;;  %v1180_v16 = vmul.f32 0.01, %v1172_v13  ;;  %v1166_v17 = vmul.f32 %v3856_v15, %v3508_v7  ;;  %v1144_v18 = vpop.f32.mrb[7].mxu0 }
 0x1f7   : > { %v1179_v19 = vmul.f32 0.01, %v1171_v14  ;;  %v1165_v21 = vmul.f32 %v3508_v7, %v1144_v18  ;;  %vm1175_vm6 = vcmp.gt.f32.partialorder %v1171_v14, 0.0 }
 0x1f8   : > { %v1184_v22 = vsel %vm1176_vm5, %v1172_v13, %v1180_v16  ;;  %v1174_v23 = vadd.f32 %v3509_v9, %v1166_v17 }
 0x1f9   : > { %1188 = vst.msk [vmem:[#allocation2 + $0x9] sm:$0xff] %vm845_vm3, %v1184_v22  ;;  %v1173_v24 = vadd.f32 %v3509_v9, %v1165_v21  ;;  %v1183_v25 = vsel %vm1175_vm6, %v1171_v14, %v1179_v19  ;;  %v1888_v21 = vld [vmem:[%s4809_s1 + $0x5c] sm:$0xff] }
 0x1fa   : > { %v1182_v26 = vmul.f32 0.01, %v1174_v23  ;;  %1187 = vst.msk [vmem:[#allocation2 + $0x1] sm:$0xff] %vm845_vm3, %v1183_v25  ;;  %3859 = vmatprep.mubr.msk.f32.mxu1 %vm845_vm3, %v1183_v25  ;;  %vm1178_vm7 = vcmp.gt.f32.partialorder %v1174_v23, 0.0  ;;  %v3537_v25 = vld [vmem:[%s4809_s1 + $0x8b] ss:$0 sm:$0xff] }
 0x1fb   : > { %v1181_v28 = vmul.f32 0.01, %v1173_v24  ;;  %3860 = vmatmul.mubr.msk.f32.vlgmr.msra.gmra.mrb[6].mxu1 %vm845_vm3, %v1184_v22  ;;  %vm1177_vm8 = vcmp.gt.f32.partialorder %v1173_v24, 0.0  ;;  %v1887_v22 = vld [vmem:[%s4809_s1 + $0x54] sm:$0xff] }
 0x1fc   : > { %3866 = vmatpush3.msra.mxu1 %v1191_v6  ;;  %v1186_v29 = vsel %vm1178_vm7, %v1174_v23, %v1182_v26  ;;  %v3536_v23 = vld [vmem:[%s4809_s1 + $0x8a] ss:$0 sm:$0xff]  ;;  %vm4285_vm7 = vmmov 0  }
 0x1fd   : > { %v1185_v30 = vsel %vm1177_vm8, %v1173_v24, %v1181_v28  ;;  %1190 = vst.msk [vmem:[#allocation2 + $0x19] sm:$0x7f] %vm849_vm4, %v1186_v29  ;;  %3873 = vmatprep.subr.mxu1 %v1193_v27 }
 0x1fe   : > { %1189 = vst.msk [vmem:[#allocation2 + $0x11] sm:$0xff] %vm845_vm3, %v1185_v30  ;;  %3862 = vmatprep.mubr.msk.f32.mxu1 %vm845_vm3, %v1185_v30 }
 0x1ff   : > { %3863 = vmatmul.mubr.msk.f32.gmra.mrb[8].mxu1 %vm845_vm3, %v1186_v29 }
 0x201   : > { %v1194_v31 = vld [vmem:[#allocation2] sm:$0xff]  ;;  %v1195_v32 = vld [vmem:[#allocation2 + $0x8] sm:$0xff] }
 0x202   : > { %3867 = vmatprep.mubr.msk.f32.mxu1 %vm845_vm3, %v1194_v31  ;;  %v1392_v35 = vld [vmem:[#allocation2 + $0x2] sm:$0xff] }
 0x203   : > { %3868 = vmatmul.mubr.msk.f32.vlgmr.msra.gmra.mrb[6].mxu1 %vm845_vm3, %v1195_v32 }
 0x204   : > { %3874 = vmatpush3.msra.mxu1 %v1193_v27  ;;  %v1395_v38 = vld [vmem:[#allocation2 + $0x1a] sm:$0x7f] }
 0x205   : > { %v1196_v33 = vld [vmem:[#allocation2 + $0x10] sm:$0xff]  ;;  %v1197_v34 = vld [vmem:[#allocation2 + $0x18] sm:$0x7f]  ;;  %3905 = vmatprep.subr.mxu1 %v1888_v21 }
 0x206   : > { %3870 = vmatprep.mubr.msk.f32.mxu1 %vm845_vm3, %v1196_v33  ;;  %v1393_v36 = vld [vmem:[#allocation2 + $0xa] sm:$0xff]  ;;  %v1394_v37 = vld [vmem:[#allocation2 + $0x12] sm:$0xff] }
 0x207   : > { %3871 = vmatmul.mubr.msk.f32.gmra.mrb[8].mxu1 %vm845_vm3, %v1197_v34 }
 0x208   : > { %3875 = vmatprep.mubr.msk.f32.mxu1 %vm845_vm3, %v1392_v35 }
 0x20b   : > { %3876 = vmatmul.mubr.msk.f32.vlgmr.msra.gmra.mrb[6].mxu1 %vm845_vm3, %v1393_v36 }
 0x20c   : > { %3878 = vmatprep.mubr.msk.f32.mxu1 %vm845_vm3, %v1394_v37  ;;  %3906 = vmatpush3.msra.mxu1 %v1888_v21 }
 0x20d   : > { %3913 = vmatprep.subr.mxu1 %v1887_v22 }
 0x20f   : > { %3879 = vmatmul.mubr.msk.f32.gmra.mrb[8].mxu1 %vm845_vm3, %v1395_v38 }
 0x2de   : > { %v3877_v42 = vpop.f32.mrb[6].mxu1 }
 0x2df   : > { %v1504_v44 = vmul.f32 %v3877_v42, %v3522_v41  ;;  %v1474_v45 = vpop.f32.mrb[7].mxu1  ;;  %v1889_v42 = vld [vmem:[%s4809_s1 + $0x64] sm:$0xff] }
 0x2e0   : > { %v1503_v46 = vmul.f32 %v3522_v41, %v1474_v45 }
 0x2e1   : > { %v1512_v47 = vadd.f32 %v3523_v43, %v1504_v44 }
 0x2e2   : > { %v1511_v48 = vadd.f32 %v3523_v43, %v1503_v46  ;;  %v3880_v49 = vpop.f32.mrb[8].mxu1 }
 0x2e3   : > { %vm1516_vm9 = vcmp.gt.f32.partialorder %v1512_v47, 0.0  ;;  %v1520_v50 = vmul.f32 0.01, %v1512_v47  ;;  %v1506_v52 = vmul.f32 %v3880_v49, %v3522_v41  ;;  %v1484_v53 = vpop.f32.mrb[9].mxu1 }
 0x2e4   : > { %vm1515_vm10 = vcmp.gt.f32.partialorder %v1511_v48, 0.0  ;;  %v1519_v55 = vmul.f32 0.01, %v1511_v48  ;;  %v1505_v56 = vmul.f32 %v3522_v41, %v1484_v53 }
 0x2e5   : > { %v1524_v57 = vsel %vm1516_vm9, %v1512_v47, %v1520_v50  ;;  %v1514_v58 = vadd.f32 %v3523_v43, %v1506_v52 }
 0x2e6   : > { %v1528_v61 = vadd.f32 %v1524_v57, %v4445_v51  ;;  %v1523_v62 = vsel %vm1515_vm10, %v1511_v48, %v1519_v55  ;;  %v1513_v63 = vadd.f32 %v3523_v43, %v1505_v56  ;;  %v2254_v56 = vld [vmem:[%s4809_s1 + $0x74] sm:$0xff]  ;;  %v3550_v57 = vld [vmem:[%s4809_s1 + $0x8c] ss:$0 sm:$0xff] }
 0x2e7   : > { %vm1518_vm11 = vcmp.gt.f32.partialorder %v1514_v58, 0.0  ;;  %v1522_v0 = vmul.f32 0.01, %v1514_v58  ;;  %v1527_v1 = vadd.f32 %v1523_v62, %v4447_v54 }
 0x2e8   : > { %v1536_v2 = vmul.f32 0.01, %v1528_v61  ;;  %vm1517_vm12 = vcmp.gt.f32.partialorder %v1513_v63, 0.0  ;;  %v1521_v3 = vmul.f32 0.01, %v1513_v63  ;;  %vm1532_vm13 = vcmp.gt.f32.partialorder %v1528_v61, 0.0 }
 0x2e9   : > { %v1526_v4 = vsel %vm1518_vm11, %v1514_v58, %v1522_v0  ;;  %vm1531_vm14 = vcmp.gt.f32.partialorder %v1527_v1, 0.0  ;;  %v1535_v5 = vmul.f32 0.01, %v1527_v1 }
 0x2ea   : > { %v1525_v6 = vsel %vm1517_vm12, %v1513_v63, %v1521_v3  ;;  %v4525_v7 = vsel %vm1532_vm13, %v1528_v61, %v1536_v2  ;;  %v1530_v8 = vadd.f32 %v1526_v4, %v4458_v59  ;;  %v3551_v61 = vld [vmem:[%s4809_s1 + $0x8d] ss:$0 sm:$0xff] }
 0x2eb   : > { %v4528_v9 = vsel %vm1531_vm14, %v1527_v1, %v1535_v5  ;;  %1544 = vst.msk [vmem:[#allocation2 + $0x9] sm:$0xff] %vm845_vm3, %v4525_v7  ;;  %v1529_v51 = vadd.f32 %v1525_v6, %v4462_v60 }
 0x2ec   : > { %1543 = vst.msk [vmem:[#allocation2 + $0x1] sm:$0xff] %vm845_vm3, %v4528_v9  ;;  %3883 = vmatprep.mubr.msk.f32.mxu0 %vm845_vm3, %v4528_v9  ;;  %vm1534_vm15 = vcmp.gt.f32.partialorder %v1530_v8, 0.0  ;;  %v1538_v54 = vmul.f32 0.01, %v1530_v8 }
 0x2ed   : > { %3884 = vmatmul.mubr.msk.f32.vlgmr.msra.gmra.mrb[8].mxu0 %vm845_vm3, %v4525_v7  ;;  %vm1533_vm0 = vcmp.gt.f32.partialorder %v1529_v51, 0.0  ;;  %v1537_v59 = vmul.f32 0.01, %v1529_v51 }
 0x2ee   : > { %3890 = vmatpush3.msra.mxu0 %v1547_v40  ;;  %v4542_v11 = vsel %vm1534_vm15, %v1530_v8, %v1538_v54 }
 0x2ef   : > { %v4544_v60 = vsel %vm1533_vm0, %v1529_v51, %v1537_v59  ;;  %1546 = vst.msk [vmem:[#allocation2 + $0x19] sm:$0x7f] %vm849_vm4, %v4542_v11  ;;  %3897 = vmatprep.subr.mxu0 %v1549_v10 }
 0x2f0   : > { %1545 = vst.msk [vmem:[#allocation2 + $0x11] sm:$0xff] %vm845_vm3, %v4544_v60  ;;  %3886 = vmatprep.mubr.msk.f32.mxu0 %vm845_vm3, %v4544_v60 }
 0x2f1   : > { %3887 = vmatmul.mubr.msk.f32.gmra.mrb[10].mxu0 %vm845_vm3, %v4542_v11 }
 0x2f3   : > { %v1550_v12 = vld [vmem:[#allocation2] sm:$0xff]  ;;  %v1551_v13 = vld [vmem:[#allocation2 + $0x8] sm:$0xff] }
 0x2f4   : > { %3891 = vmatprep.mubr.msk.f32.mxu0 %vm845_vm3, %v1550_v12  ;;  %v1748_v16 = vld [vmem:[#allocation2 + $0x2] sm:$0xff] }
 0x2f5   : > { %3892 = vmatmul.mubr.msk.f32.vlgmr.msra.gmra.mrb[8].mxu0 %vm845_vm3, %v1551_v13 }
 0x2f6   : > { %3898 = vmatpush3.msra.mxu0 %v1549_v10  ;;  %v1751_v19 = vld [vmem:[#allocation2 + $0x1a] sm:$0x7f] }
 0x2f7   : > { %v1552_v14 = vld [vmem:[#allocation2 + $0x10] sm:$0xff]  ;;  %v1553_v15 = vld [vmem:[#allocation2 + $0x18] sm:$0x7f]  ;;  %3929 = vmatprep.subr.mxu0 %v4284_v20 }
 0x2f8   : > { %3894 = vmatprep.mubr.msk.f32.mxu0 %vm845_vm3, %v1552_v14  ;;  %v1749_v17 = vld [vmem:[#allocation2 + $0xa] sm:$0xff]  ;;  %v1750_v18 = vld [vmem:[#allocation2 + $0x12] sm:$0xff] }
 0x2f9   : > { %3895 = vmatmul.mubr.msk.f32.gmra.mrb[10].mxu0 %vm845_vm3, %v1553_v15 }
 0x2fa   : > { %3899 = vmatprep.mubr.msk.f32.mxu0 %vm845_vm3, %v1748_v16 }
 0x2fd   : > { %3900 = vmatmul.mubr.msk.f32.vlgmr.msra.gmra.mrb[8].mxu0 %vm845_vm3, %v1749_v17 }
 0x2fe   : > { %3902 = vmatprep.mubr.msk.f32.mxu0 %vm845_vm3, %v1750_v18  ;;  %3930 = vmatpush3.msra.mxu0 %v2254_v56 }
 0x2ff   : > { %3934 = vmatprep.subr.mxu0 %v4284_v20 }
 0x301   : > { %3903 = vmatmul.mubr.msk.f32.gmra.mrb[10].mxu0 %vm845_vm3, %v1751_v19 }
 0x302   : > { %3931 = vmatprep.mubr.msk.f32.mxu0 %vm4285_vm7, %v4284_v20 }
 0x3d0   : > { %v3901_v24 = vpop.f32.mrb[8].mxu0 }
 0x3d1   : > { %v1860_v26 = vmul.f32 %v3901_v24, %v3536_v23  ;;  %v1830_v27 = vpop.f32.mrb[9].mxu0 }
 0x3d2   : > { %v1859_v28 = vmul.f32 %v3536_v23, %v1830_v27 }
 0x3d3   : > { %v1868_v29 = vadd.f32 %v3537_v25, %v1860_v26 }
 0x3d4   : > { %v1867_v30 = vadd.f32 %v3537_v25, %v1859_v28  ;;  %v3904_v31 = vpop.f32.mrb[10].mxu0 }
 0x3d5   : > { %vm1872_vm1 = vcmp.gt.f32.partialorder %v1868_v29, 0.0  ;;  %v1876_v32 = vmul.f32 0.01, %v1868_v29  ;;  %v1862_v33 = vmul.f32 %v3904_v31, %v3536_v23  ;;  %v1840_v34 = vpop.f32.mrb[11].mxu0 }
 0x3d6   : > { %v1875_v35 = vmul.f32 0.01, %v1867_v30  ;;  %v1861_v36 = vmul.f32 %v3536_v23, %v1840_v34  ;;  %vm1871_vm2 = vcmp.gt.f32.partialorder %v1867_v30, 0.0 }
 0x3d7   : > { %v1880_v37 = vsel %vm1872_vm1, %v1868_v29, %v1876_v32  ;;  %v1870_v38 = vadd.f32 %v3537_v25, %v1862_v33 }
 0x3d8   : > { %1884 = vst.msk [vmem:[#allocation2 + $0x9] sm:$0xff] %vm845_vm3, %v1880_v37  ;;  %v1869_v39 = vadd.f32 %v3537_v25, %v1861_v36  ;;  %v1879_v40 = vsel %vm1871_vm2, %v1867_v30, %v1875_v35  ;;  %v2406_v36 = vld [vmem:[%s4809_s1 + $0x7c] sm:$0xff] }
 0x3d9   : > { %v1878_v41 = vmul.f32 0.01, %v1870_v38  ;;  %3907 = vmatprep.mubr.msk.f32.mxu1 %vm845_vm3, %v1879_v40  ;;  %1883 = vst.msk [vmem:[#allocation2 + $0x1] sm:$0xff] %vm845_vm3, %v1879_v40  ;;  %vm1874_vm5 = vcmp.gt.f32.partialorder %v1870_v38, 0.0  ;;  %v4286_v40 = vmov 0.0|0.0  }
 0x3da   : > { %v1877_v43 = vmul.f32 0.01, %v1869_v39  ;;  %3908 = vmatmul.mubr.msk.f32.vlgmr.msra.gmra.mrb[10].mxu1 %vm845_vm3, %v1880_v37  ;;  %vm1873_vm6 = vcmp.gt.f32.partialorder %v1869_v39, 0.0 }
 0x3db   : > { %3914 = vmatpush3.msra.mxu1 %v1887_v22  ;;  %v1882_v44 = vsel %vm1874_vm5, %v1870_v38, %v1878_v41  ;;  %v3571_v41 = vld [vmem:[%s4810_s2] sm:$0xff]  }
 0x3dc   : > { %v1881_v45 = vsel %vm1873_vm6, %v1869_v39, %v1877_v43  ;;  %1886 = vst.msk [vmem:[#allocation2 + $0x19] sm:$0x7f] %vm849_vm4, %v1882_v44  ;;  %3921 = vmatprep.subr.mxu1 %v1889_v42  ;;  %v3632_v43 = vld [vmem:[%s4810_s2 + $0x38] sm:$0xff]  }
 0x3dd   : > { %3910 = vmatprep.mubr.msk.f32.mxu1 %vm845_vm3, %v1881_v45  ;;  %1885 = vst.msk [vmem:[#allocation2 + $0x11] sm:$0xff] %vm845_vm3, %v1881_v45  ;;  %v3634_v45 = vld [vmem:[%s4810_s2 + $0x48] sm:$0xff]  }
 0x3de   : > { %3911 = vmatmul.mubr.msk.f32.gmra.mrb[12].mxu1 %vm845_vm3, %v1882_v44  ;;  %v3633_v44 = vld [vmem:[%s4810_s2 + $0x40] sm:$0xff]  }
 0x3e0   : > { %v1890_v46 = vld [vmem:[#allocation2] sm:$0xff]  ;;  %v1891_v47 = vld [vmem:[#allocation2 + $0x8] sm:$0xff] }
 0x3e1   : > { %3915 = vmatprep.mubr.msk.f32.mxu1 %vm845_vm3, %v1890_v46  ;;  %v2088_v50 = vld [vmem:[#allocation2 + $0x2] sm:$0xff]  ;;  %v3635_v46 = vld [vmem:[%s4810_s2 + $0x50] sm:$0xff]  }
 0x3e2   : > { %3916 = vmatmul.mubr.msk.f32.vlgmr.msra.gmra.mrb[10].mxu1 %vm845_vm3, %v1891_v47  ;;  %v3636_v47 = vld [vmem:[%s4810_s2 + $0x58] sm:$0xff]  }
 0x3e3   : > { %3922 = vmatpush3.msra.mxu1 %v1889_v42  ;;  %v2091_v55 = vld [vmem:[#allocation2 + $0x1a] sm:$0x7f]  ;;  %v3631_v42 = vld [vmem:[%s4810_s2 + $0x30] sm:$0xff]  }
 0x3e4   : > { %v1892_v48 = vld [vmem:[#allocation2 + $0x10] sm:$0xff]  ;;  %v1893_v49 = vld [vmem:[#allocation2 + $0x18] sm:$0x7f]  ;;  %3944 = vmatprep.subr.mxu1 %v4284_v20 }
 0x3e5   : > { %3918 = vmatprep.mubr.msk.f32.mxu1 %vm845_vm3, %v1892_v48  ;;  %v2089_v52 = vld [vmem:[#allocation2 + $0xa] sm:$0xff]  ;;  %v2090_v53 = vld [vmem:[#allocation2 + $0x12] sm:$0xff]  ;;  %v3637_v48 = vld [vmem:[%s4810_s2 + $0x60] sm:$0xff]  }
 0x3e6   : > { %3919 = vmatmul.mubr.msk.f32.gmra.mrb[12].mxu1 %vm845_vm3, %v1893_v49  ;;  %v2482_v49 = vlaneseq }
 0x3e7   : > { %3923 = vmatprep.mubr.msk.f32.mxu1 %vm845_vm3, %v2088_v50 }
 0x3e8   : > { %v2483_v50 = vshrl.u32 %v2482_v49, 7 }
 0x3ea   : > { %3924 = vmatmul.mubr.msk.f32.vlgmr.msra.gmra.mrb[10].mxu1 %vm845_vm3, %v2089_v52  ;;  %v197_v52 = vld [vmem:[%s4809_s1 + $0x8e] sm:$0x1] }
 0x3eb   : > { %3926 = vmatprep.mubr.msk.f32.mxu1 %vm845_vm3, %v2090_v53  ;;  %3945 = vmatpush3.msra.mxu1 %v2254_v56  ;;  %v2243_v53 = vmul.f32 0.5, %v197_v52 }
 0x3ec   : > { %3949 = vmatprep.subr.mxu1 %v4284_v20 }
 0x3ee   : > { %3927 = vmatmul.mubr.msk.f32.gmra.mrb[12].mxu1 %vm845_vm3, %v2091_v55  ;;  %v2484_v55 = vsub.s32 0, %v2483_v50 }
 0x3ef   : > { %3946 = vmatprep.mubr.msk.f32.mxu1 %vm4285_vm7, %v4284_v20 }
 0x3f0   : > { %v2485_v56 = vrot.slane %v2243_v53, %v2484_v55 }
 0x4bd   : > { %v3925_v58 = vpop.f32.mrb[10].mxu1 }
 0x4be   : > { %v2200_v62 = vmul.f32 %v3925_v58, %v3550_v57  ;;  %v2170_v63 = vpop.f32.mrb[11].mxu1 }
 0x4bf   : > { %v2199_v0 = vmul.f32 %v3550_v57, %v2170_v63 }
 0x4c0   : > { %v2208_v1 = vadd.f32 %v3551_v61, %v2200_v62 }
 0x4c1   : > { %v2207_v2 = vadd.f32 %v3551_v61, %v2199_v0  ;;  %v3928_v3 = vpop.f32.mrb[12].mxu1 }
 0x4c2   : > { %vm2212_vm8 = vcmp.gt.f32.partialorder %v2208_v1, 0.0  ;;  %v2216_v4 = vmul.f32 0.01, %v2208_v1  ;;  %v2202_v5 = vmul.f32 %v3928_v3, %v3550_v57  ;;  %v2180_v6 = vpop.f32.mrb[13].mxu1 }
 0x4c3   : > { %vm2211_vm9 = vcmp.gt.f32.partialorder %v2207_v2, 0.0  ;;  %v2215_v8 = vmul.f32 0.01, %v2207_v2  ;;  %v2201_v51 = vmul.f32 %v3550_v57, %v2180_v6  ;;  %v3555_v57 = vld [vmem:[%s4809_s1 + $0x8f] ss:$0 sm:$0xff] }
 0x4c4   : > { %v2220_v54 = vsel %vm2212_vm8, %v2208_v1, %v2216_v4  ;;  %v2210_v10 = vadd.f32 %v3551_v61, %v2202_v5  ;;  %v3626_v6 = vld [vmem:[%s4810_s2 + $0x8] sm:$0xff]  }
 0x4c5   : > { %v2224_v59 = vadd.f32 %v2220_v54, %v4525_v7  ;;  %v2219_v12 = vsel %vm2211_vm9, %v2207_v2, %v2215_v8  ;;  %v2209_v13 = vadd.f32 %v3551_v61, %v2201_v51  ;;  %v3627_v51 = vld [vmem:[%s4810_s2 + $0x10] sm:$0xff]  }
 0x4c6   : > { %v2223_v14 = vadd.f32 %v2219_v12, %v4528_v9  ;;  %vm2214_vm10 = vcmp.gt.f32.partialorder %v2210_v10, 0.0  ;;  %v2218_v15 = vmul.f32 0.01, %v2210_v10  ;;  %v3629_v12 = vld [vmem:[%s4810_s2 + $0x20] sm:$0xff]  }
 0x4c7   : > { %vm2228_vm11 = vcmp.gt.f32.partialorder %v2224_v59, 0.0  ;;  %v2232_v16 = vmul.f32 0.01, %v2224_v59  ;;  %vm2213_vm12 = vcmp.gt.f32.partialorder %v2209_v13, 0.0  ;;  %v2217_v17 = vmul.f32 0.01, %v2209_v13 }
 0x4c8   : > { %vm2227_vm13 = vcmp.gt.f32.partialorder %v2223_v14, 0.0  ;;  %v2231_v18 = vmul.f32 0.01, %v2223_v14  ;;  %v2222_v19 = vsel %vm2214_vm10, %v2210_v10, %v2218_v15  ;;  %v3628_v10 = vld [vmem:[%s4810_s2 + $0x18] sm:$0xff]  }
 0x4c9   : > { %v2236_v21 = vsel %vm2228_vm11, %v2224_v59, %v2232_v16  ;;  %v2226_v22 = vadd.f32 %v2222_v19, %v4542_v11  ;;  %v2221_v23 = vsel %vm2213_vm12, %v2209_v13, %v2217_v17  ;;  %v2248_v11 = vld [vmem:[%s4809_s1 + $0x6c] sm:$0xff]  ;;  %v3290_v17 = vld [vmem:[%s4811_s3] sm:$0xff] }
 0x4ca   : > { %2240 = vst.msk [vmem:[#allocation2 + $0x9] sm:$0xff] %vm845_vm3, %v2236_v21  ;;  %v2235_v7 = vsel %vm2227_vm13, %v2223_v14, %v2231_v18  ;;  %v2225_v24 = vadd.f32 %v2221_v23, %v4544_v60  ;;  %v3630_v14 = vld [vmem:[%s4810_s2 + $0x28] sm:$0xff]   ;;  %v3292_v19 = vld [vmem:[%s4811_s3 + $0x10] sm:$0xff]  ;;  %v3294_v23 = vld [vmem:[%s4811_s3 + $0x20] sm:$0xff] }
 0x4cb   : > { %2239 = vst.msk [vmem:[#allocation2 + $0x1] sm:$0xff] %vm845_vm3, %v2235_v7  ;;  %vm2230_vm14 = vcmp.gt.f32.partialorder %v2226_v22, 0.0  ;;  %v2234_v9 = vmul.f32 0.01, %v2226_v22  ;;  %v3638_v16 = vld [vmem:[%s4810_s2 + $0x68] sm:$0xff]  }
 0x4cc   : > { %vm2229_vm15 = vcmp.gt.f32.partialorder %v2225_v24, 0.0  ;;  %v2233_v25 = vmul.f32 0.01, %v2225_v24  ;;  %v3291_v18 = vld [vmem:[%s4811_s3 + $0x8] sm:$0xff] }
 0x4cd   : > { %v2238_v26 = vsel %vm2230_vm14, %v2226_v22, %v2234_v9  ;;  %v4098_v21 = vpack.c.bf16 %v3291_v18, %v3290_v17  ;;  %v3295_v7 = vld [vmem:[%s4811_s3 + $0x28] sm:$0xff]  ;;  %v2715_v9 = vld [vmem:[%s4811_s3 + $0x40] sm:$0x1] }
 0x4ce   : > { %2242 = vst.msk [vmem:[#allocation2 + $0x19] sm:$0x7f] %vm849_vm4, %v2238_v26  ;;  %v2237_v27 = vsel %vm2229_vm15, %v2225_v24, %v2233_v25  ;;  %v4104_v24 = vpack.c.bf16 %v3295_v7, %v3294_v23  ;;  %vm3299_vm4 = vcmask 523264  }
 0x4cf   : > { %2241 = vst.msk [vmem:[#allocation2 + $0x11] sm:$0xff] %vm845_vm3, %v2237_v27 }
 0x4d6   : > { %v2251_v28 = vld [vmem:[#allocation2 + $0x3] ss:$4 sm:$0x3f]  ;;  %v2253_v29 = vld [vmem:[#allocation2 + $0x4] ss:$4 sm:$0x3f] }
 0x4d7   : > { %v2255_v30 = vadd.f32 %v2253_v29, %v2251_v28  ;;  %v2403_v60 = vld [vmem:[#allocation2 + $0x5] ss:$4 sm:$0x3f]  ;;  %v2405_v31 = vld [vmem:[#allocation2 + $0x6] ss:$4 sm:$0x3f] }
 0x4d8   : > { %v2407_v32 = vadd.f32 %v2405_v31, %v2403_v60  ;;  %v2245_v33 = vld [vmem:[#allocation2 + $0x1] ss:$4 sm:$0x3f]  ;;  %v2247_v34 = vld [vmem:[#allocation2 + $0x2] ss:$4 sm:$0x3f] }
 0x4d9   : > { %3932 = vmatmul.mubr.msk.f32.vlgmr.msra.gmra.mrb[12].mxu0 %vm845_vm3, %v2255_v30  ;;  %v2249_v35 = vadd.f32 %v2247_v34, %v2245_v33  ;;  %v2633_v37 = vld [vmem:[#allocation2 + $0x7] ss:$4 sm:$0x3f]  ;;  %v2635_v38 = vld [vmem:[#allocation2 + $0x8] ss:$4 sm:$0x3f] }
 0x4da   : > { %3935 = vmatpush3.msra.mxu0 %v2248_v11  ;;  %3947 = vmatmul.mubr.msk.f32.vlgmr.msra.gmra.mrb[14].mxu1 %vm845_vm3, %v2407_v32  ;;  %v2636_v39 = vadd.f32 %v2635_v38, %v2633_v37  ;;  %v3296_v28 = vld [vmem:[%s4811_s3 + $0x30] sm:$0xff]  ;;  %v3297_v29 = vld [vmem:[%s4811_s3 + $0x38] sm:$0xff]  ;;  %v3218_v60 = vld [vmem:[%s4811_s3 + $0x41] sm:$0x1] }
 0x4db   : > { %3950 = vmatpush3.msra.mxu1 %v2248_v11  ;;  %3936 = vmatprep.mubr.msk.f32.mxu0 %vm4285_vm7, %v4284_v20 }
 0x4dc   : > { %3939 = vmatprep.subr.mxu0 %v4284_v20  ;;  %3951 = vmatprep.mubr.msk.f32.mxu1 %vm4285_vm7, %v4284_v20 }
 0x4dd   : > { %3954 = vmatprep.subr.mxu1 %v4284_v20 }
 0x4e1   : > { %3937 = vmatmul.mubr.msk.f32.vlgmr.msra.gmra.mrb[12].mxu0 %vm845_vm3, %v2249_v35  ;;  %v3298_v35 = vld [vmem:[%s4811_s3 + $0x42] sm:$0x1] }
 0x4e2   : > { %3940 = vmatpush3.msra.mxu0 %v2406_v36  ;;  %3952 = vmatmul.mubr.msk.f32.vlgmr.msra.gmra.mrb[14].mxu1 %vm845_vm3, %v2255_v30  ;;  %v4107_v30 = vpack.c.bf16 %v3297_v29, %v3296_v28 }
 0x4e3   : > { %3955 = vmatpush3.msra.mxu1 %v2406_v36  ;;  %3941 = vmatprep.mubr.msk.f32.mxu0 %vm4285_vm7, %v4284_v20 }
 0x4e4   : > { %3956 = vmatprep.mubr.msk.f32.mxu1 %vm4285_vm7, %v4284_v20  ;;  %4055 = vmatprep.subr.bf16.mxu0 %v4286_v40 }
 0x4e5   : > { %4073 = vmatprep.subr.bf16.mxu1 %v4286_v40 }
 0x4e9   : > { %3942 = vmatmul.mubr.msk.f32.vlgmr.msra.gmra.mrb[12].mxu0 %vm845_vm3, %v2407_v32 }
 0x4ea   : > { %3957 = vmatmul.mubr.msk.f32.vlgmr.msra.gmra.mrb[14].mxu1 %vm845_vm3, %v2636_v39  ;;  %3963 = vmatprep.mubr.msk.f32.mxu0 %vm4285_vm7, %v4284_v20  ;;  %vm2720_vm3 = vcmask 130048  }
 0x4eb   : > { %4033 = vmatprep.mubr.msk.f32.mxu1 %vm4285_vm7, %v4284_v20  ;;  %4057 = vmatpush3.bf16.msra.mxu0 %v3571_v41 }
 0x4ec   : > { %4058 = vmatprep.subr.bf16.mxu0 %v4286_v40  ;;  %4075 = vmatpush3.bf16.msra.mxu1 %v3631_v42 }
 0x4ed   : > { %4076 = vmatprep.subr.bf16.mxu1 %v4286_v40 }
 0x4f0   : > { %4078 = vmatpush3.bf16.msra.mxu1 %v3632_v43 }
 0x4f1   : > { %4079 = vmatprep.subr.bf16.mxu1 %v4286_v40 }
 0x4f4   : > { %4081 = vmatpush3.bf16.msra.mxu1 %v3633_v44 }
 0x4f5   : > { %4082 = vmatprep.subr.bf16.mxu1 %v4286_v40 }
 0x4f8   : > { %4084 = vmatpush3.bf16.msra.mxu1 %v3634_v45 }
 0x4f9   : > { %4085 = vmatprep.subr.bf16.mxu1 %v4286_v40 }
 0x4fc   : > { %4087 = vmatpush3.bf16.msra.mxu1 %v3635_v46 }
 0x4fd   : > { %4088 = vmatprep.subr.bf16.mxu1 %v4286_v40 }
 0x500   : > { %4090 = vmatpush3.bf16.msra.mxu1 %v3636_v47 }
 0x501   : > { %4091 = vmatprep.subr.bf16.mxu1 %v4286_v40 }
 0x504   : > { %4093 = vmatpush3.bf16.msra.mxu1 %v3637_v48 }
 0x505   : > { %4094 = vmatprep.subr.bf16.mxu1 %v4286_v40 }
 0x508   : > { %4096 = vmatpush3.bf16.msra.mxu1 %v3638_v16 }
 0x5bc   : > { %v2477_v58 = vpop.f32.mrb[12].mxu0 }
 0x5bd   : > { %v2486_v61 = vmul.f32 %v2485_v56, %v2477_v58  ;;  %v2706_v62 = vpop.f32.mrb[14].mxu1  ;;  %v3943_v63 = vpop.f32.mrb[13].mxu0 }
 0x5be   : > { %v2711_v0 = vmul.f32 %v2706_v62, %v2485_v56  ;;  %v3958_v1 = vpop.f32.mrb[15].mxu1 }
 0x5bf   : > { %v2491_v2 = vadd.f32 %v3555_v57, %v2486_v61 }
 0x5c0   : > { %v2712_v3 = vadd.f32 %v3555_v57, %v2711_v0 }
 0x5c2   : > { %v2713_v4 = vmax.f32 %v2491_v2, %v2712_v3 }
 0x5c4   : > { %v2714_v5 = vmax.f32 %v2713_v4, 0.0 }
 0x5c6   : > { %3964 = vmatmul.mubr.msk.f32.vlgmr.msra.gmra.mrb[14].mxu0 %vm2720_vm3, %v2714_v5  ;;  %v2799_v8 = vrot.slane %v2714_v5, 1  ;;  %v2877_v54 = vrot.slane %v2714_v5, 2  ;;  %v2955_v59 = vrot.slane %v2714_v5, 3  ;;  %v3033_v13 = vrot.slane %v2714_v5, 4 }
 0x5c7   : > { %4060 = vmatpush3.bf16.msra.mxu0 %v3626_v6  ;;  %3970 = vmatprep.mubr.msk.f32.mxu0 %vm4285_vm7, %v4284_v20  ;;  %v3111_v15 = vrot.slane %v2714_v5, 5 }
 0x5c8   : > { %4061 = vmatprep.subr.bf16.mxu0 %v4286_v40 }
 0x5ce   : > { %3971 = vmatmul.mubr.msk.f32.vlgmr.msra.gmra.mrb[14].mxu0 %vm2720_vm3, %v2799_v8 }
 0x5cf   : > { %4063 = vmatpush3.bf16.msra.mxu0 %v3627_v51  ;;  %3977 = vmatprep.mubr.msk.f32.mxu0 %vm4285_vm7, %v4284_v20 }
 0x5d0   : > { %4064 = vmatprep.subr.bf16.mxu0 %v4286_v40 }
 0x5d6   : > { %3978 = vmatmul.mubr.msk.f32.vlgmr.msra.gmra.mrb[14].mxu0 %vm2720_vm3, %v2877_v54 }
 0x5d7   : > { %4066 = vmatpush3.bf16.msra.mxu0 %v3628_v10  ;;  %3984 = vmatprep.mubr.msk.f32.mxu0 %vm4285_vm7, %v4284_v20 }
 0x5d8   : > { %4067 = vmatprep.subr.bf16.mxu0 %v4286_v40 }
 0x5de   : > { %3985 = vmatmul.mubr.msk.f32.vlgmr.msra.gmra.mrb[14].mxu0 %vm2720_vm3, %v2955_v59 }
 0x5df   : > { %4069 = vmatpush3.bf16.msra.mxu0 %v3629_v12  ;;  %3991 = vmatprep.mubr.msk.f32.mxu0 %vm4285_vm7, %v4284_v20 }
 0x5e0   : > { %4070 = vmatprep.subr.bf16.mxu0 %v4286_v40 }
 0x5e6   : > { %3992 = vmatmul.mubr.msk.f32.vlgmr.msra.gmra.mrb[14].mxu0 %vm2720_vm3, %v3033_v13 }
 0x5e7   : > { %4072 = vmatpush3.bf16.msra.mxu0 %v3630_v14  ;;  %3998 = vmatprep.mubr.msk.f32.mxu0 %vm4285_vm7, %v4284_v20 }
 0x5e8   : > { %4097 = vmatprep.subr.bf16.mxu0 %v4286_v40 }
 0x5ee   : > { %3999 = vmatmul.mubr.msk.f32.vlgmr.msra.gmra.mrb[14].mxu0 %vm2720_vm3, %v3111_v15 }
 0x5ef   : > { %4052 = vmatprep.mubr.msk.f32.mxu0 %vm4285_vm7, %v4284_v20  ;;  %v3293_v20 = vld [vmem:[%s4811_s3 + $0x18] sm:$0xff]  ;;  %4099 = vmatpush3.bf16.msra.mxu0 %v4098_v21 }
 0x5f0   : > { %v4101_v22 = vpack.c.bf16 %v3293_v20, %v3292_v19  ;;  %4100 = vmatprep.subr.bf16.mxu0 %v4286_v40 }
 0x5f3   : > { %4102 = vmatpush3.bf16.msra.mxu0 %v4101_v22 }
 0x5f4   : > { %4103 = vmatprep.subr.bf16.mxu0 %v4286_v40 }
 0x5f7   : > { %4105 = vmatpush3.bf16.msra.mxu0 %v4104_v24 }
 0x5f8   : > { %4106 = vmatprep.subr.bf16.mxu0 %v4286_v40 }
 0x5fb   : > { %4108 = vmatpush3.bf16.msra.mxu0 %v4107_v30 }
 0x6c1   : > { %v3180_v25 = vpop.f32.mrb[14].mxu0 }
 0x6c2   : > { %v4113_v26 = vadd.f32 %v3180_v25, %v2715_v9  ;;  %v4000_v27 = vpop.f32.mrb[15].mxu0 }
 0x6c4   : > { %v3185_v11 = vmax.f32 %v4113_v26, 0.0 }
 0x6c6   : > { %4034 = vmatmul.mubr.f32.vlgmr.msra.gmra.mrb[16].mxu1 %v3185_v11 }
 0x799   : > { %v3285_v31 = vpop.f32.mrb[16].mxu1 }
 0x79a   : > { %v3286_v32 = vadd.f32 %v3285_v31, %v3218_v60  ;;  %v4035_v33 = vpop.f32.mrb[17].mxu1 }
 0x79c   : > { %v3289_v34 = vmax.f32 %v3286_v32, 0.0 }
 0x79e   : > { %4053 = vmatmul.mubr.msk.f32.vlgmr.msra.gmra.mrb[16].mxu0 %vm3299_vm4, %v3289_v34 }
 0x871   : > { %v3369_v36 = vpop.f32.mrb[16].mxu0 }
 0x872   : > { %v3370_v37 = vadd.f32 %v3369_v36, %v3298_v35  ;;  %v4054_v38 = vpop.f32.mrb[17].mxu0 }
 0x874   : > { %v3373_v39 = vmax.f32 %v3370_v37, 0.0 }
 0x876   : > { %3374 = vst [vmem:[%s189_s22] sm:$0x1] %v3373_v39 }
 0x877   : > { %4233 = shalt.err (!%p4230_p3)
}
 0x878   : > { %s4234_s8 = scalar_lea.hbm %s4766_s29, 16  ;;  %s4238_s11 = scalar_lea.hbm %s4812_s4, 32 }
 0x879   : > { %p4235_p4 = scmp.ne.s32.totalorder %s4766_s29, %s4234_s8  ;;  %p4239_p9 = scmp.lt.u32.totalorder %s4766_s29, %s4812_s4 }
 0x87a   : > { %p4240_p10 = scmp.lt.u32.totalorder %s4238_s11, %s4234_s8  ;;  %p4242_p12 = scmp.lt.u32.totalorder %s4234_s8, %s4766_s29 }
 0x87b   : > { %p4236_p7 = pnand %p4235_p4, %p4351_p5 }
 0x87c   : > { %p4241_p11 = por %p4240_p10, %p4239_p9 }
 0x87d   : > { %p4237_p8 = pneg %p4236_p7 }
 0x87e   : > { %p4243_p13 = por %p4242_p12, %p4241_p11 }
 0x880   : > { %p4244_p0 = pnand %p4243_p13, %p4237_p8 }
 0x882   : > { %4247 = shalt.err (!%p4244_p0)
}
 0x883   : > { %4178 = dma.vmem_to_hbm [thread:$0]  (%p4351_p5), %s4768_s23, 16, %s4766_s29, %s3376_s30  }
 0x884 PF: > { %p4184_p1 = scmp.ge.s32.totalorder %s4282_s18, 2  ;;  %s3400_s14 = sand.u32 1, %s4270_s15  }
 0x885   : > { %s3401_s20 = scalar_lea.sflag [#allocation4], %s3400_s14 }
 0x886   : > { %p4181_p2 = pnand %p4184_p1, %p4355_p6 }
 0x888   : > { %4265 = dma.done.wait (!%p4181_p2), %s3401_s20, 16  }
 0x889   : > { %4267 = vsyncadd (!%p4181_p2), %s3401_s20, 4294967280  ;;  %p14_p3 = scmp.ge.s32.totalorder %s4338_s21, 4   ;;  %s4815_s15 = smov %s4274_s16 }
 0x88a   : > { %s4816_s16 = smov %s4278_s17  ;;  %s4817_s17 = smov %s4349_s24 }
 0x88b   : > { %s4818_s18 = smov %s4338_s21  ;;  %16 = sbr.rel (!%p14_p3) target bundleno = 3 (0x3), region = 94 }
 0x892   :  { %3405 = vsyncpa [#allocation4], 1 }
 0x893   :  { %3407 = vsyncpa [#allocation4 + $0x1], 1 }

</bundles_post_ra>
